<compile_context>
chip_gen: v7x
topology: tpu7x:2x2x1
jax: 0.10.0
libtpu: 0.0.40
codegen_flags: <defaults>
</compile_context>

<pallas_src>
import jax
import jax.numpy as jnp
from jax import lax
from jax.experimental import pallas as pl
from jax.experimental.pallas import tpu as pltpu
import numpy as np


# ----------------------------------------------------------------------------
# Fused Pallas kernel: all LSTM layers + FC head (wavefront over layer x time)
# ----------------------------------------------------------------------------
def _make_fused_kernel(num_layers, B, T, H):
    """Build the fused kernel for static (num_layers, B, T, H)."""

    def kernel(*refs):
        # refs = (x_flat, [wih, whh, b] * L, fc_w, fc_b, o_ref)
        x_ref = refs[0]                              # (B*T, D)  f32, batch-major rows
        layer_refs = refs[1:1 + 3 * num_layers]
        fc_w_ref = refs[1 + 3 * num_layers]          # (1, H)    f32
        fc_b_ref = refs[2 + 3 * num_layers]          # (1, 1)    f32
        o_ref = refs[3 + 3 * num_layers]             # (B, 1)    f32

        # Load all weights once (everything stays resident; no grid).
        wih, whh = [], []
        for l in range(num_layers):
            wih.append(layer_refs[3 * l][...])       # (d_in, 4H)  f32 (l=0) / bf16
            whh.append(layer_refs[3 * l + 1][...])   # (H,    4H)  bf16
        b0 = layer_refs[2][...]                      # (1, 4H) f32, layer-0 bias
        # Hoisted (B,4H) bias broadcasts for layers >= 1 (used every wave).
        bias_b = [None] + [
            jnp.broadcast_to(layer_refs[3 * l + 2][...], (B, 4 * H))
            for l in range(1, num_layers)
        ]

        # ---- Layer-0 input projection: hoisted, f32, off the critical path.
        gx0 = jnp.dot(x_ref[...], wih[0],
                      preferred_element_type=jnp.float32) + b0       # (B*T, 4H)
        gx0 = gx0.reshape(B, T, 4 * H)               # tile-preserving split

        def cell(gates, c_prev):
            # Gate columns pre-permuted host-side to [i | f | o | g]:
            # one sigmoid over 3H lanes + one tanh over H lanes (+ tanh(c)).
            sg = jax.nn.sigmoid(gates[:, :3 * H])
            g_g = jnp.tanh(gates[:, 3 * H:])
            i_g = sg[:, 0 * H:1 * H]
            f_g = sg[:, 1 * H:2 * H]
            o_g = sg[:, 2 * H:3 * H]
            c_new = f_g * c_prev + i_g * g_g
            h_new = o_g * jnp.tanh(c_new)
            return h_new, c_new

        # Per-layer running state (traced values; zero initial state).
        h = [jnp.zeros((B, H), jnp.float32) for _ in range(num_layers)]
        c = [jnp.zeros((B, H), jnp.float32) for _ in range(num_layers)]

        # ---- Wavefront: wave s handles layer l at timestep t = s - l. ----
        # Iterate layers deepest-first inside a wave so layer l consumes
        # h[l-1] from wave s-1 before layer l-1 overwrites it this wave.
        for s in range(T + num_layers - 1):
            for l in range(num_layers - 1, -1, -1):
                t = s - l
                if t < 0 or t >= T:
                    continue
                if l == 0:
                    gates = gx0[:, t, :]                              # bias folded in
                else:
                    gates = jnp.dot(h[l - 1].astype(jnp.bfloat16), wih[l],
                                    preferred_element_type=jnp.float32) + bias_b[l]
                if t > 0:   # h[l] == 0 at t == 0 -> skip the recurrent matmul
                    gates = gates + jnp.dot(h[l].astype(jnp.bfloat16), whh[l],
                                            preferred_element_type=jnp.float32)
                h[l], c[l] = cell(gates, c[l])

        # ---- FC head on the last timestep of the top layer ----
        # VPU multiply + lane reduction instead of a 1-column MXU matmul.
        out = jnp.sum(h[-1] * fc_w_ref[...], axis=-1, keepdims=True) + fc_b_ref[...]
        o_ref[...] = out.astype(o_ref.dtype)

    return kernel


# ----------------------------------------------------------------------------
# Wrapper
# ----------------------------------------------------------------------------
@jax.jit
def stock_lstm_forward(x, params):
    """x: (B, T, D) batch_first float32 -> (B, 1) float32."""
    B, T, D = x.shape
    num_layers = len(params["lstm"])
    H = params["lstm"][0][1].shape[0]

    # Free reshape (contiguous batch_first array) -- no transpose / extra HBM pass.
    x_flat = x.reshape(B * T, D)

    flat_args = [x_flat]
    for (wih, whh, b) in params["lstm"]:
        flat_args += [wih, whh, b]
    flat_args += [params["fc_w"], params["fc_b"]]

    vmem = pl.BlockSpec(memory_space=pltpu.MemorySpace.VMEM)
    return pl.pallas_call(
        _make_fused_kernel(num_layers, B, T, H),
        out_shape=jax.ShapeDtypeStruct((B, 1), jnp.float32),
        in_specs=[vmem] * len(flat_args),
        out_specs=pl.BlockSpec(memory_space=pltpu.MemorySpace.VMEM),
    )(*flat_args)


# ----------------------------------------------------------------------------
# Deterministic parameter init (shapes match nn.LSTM / nn.Linear)
# ----------------------------------------------------------------------------
def init_params(key, input_size, hidden_size, num_layers):
    H = hidden_size
    k = 1.0 / np.sqrt(H)
    # Host-side gate-column permutation: PyTorch [i, f, g, o] -> kernel [i, f, o, g].
    perm = np.concatenate([np.arange(0, 2 * H),
                           np.arange(3 * H, 4 * H),
                           np.arange(2 * H, 3 * H)])

    lstm_ref, lstm_kern = [], []
    for layer in range(num_layers):
        d_in = input_size if layer == 0 else H
        key, k1, k2, k3, k4 = jax.random.split(key, 5)
        w_ih = jax.random.uniform(k1, (4 * H, d_in), jnp.float32, -k, k)
        w_hh = jax.random.uniform(k2, (4 * H, H), jnp.float32, -k, k)
        b_ih = jax.random.uniform(k3, (4 * H,), jnp.float32, -k, k)
        b_hh = jax.random.uniform(k4, (4 * H,), jnp.float32, -k, k)

        # f32 reference keeps PyTorch gate order / orientation.
        lstm_ref.append((w_ih.T, w_hh.T, (b_ih + b_hh).reshape(1, 4 * H)))

        # Kernel weights: permuted gate columns, transposed to (d_in, 4H)/(H, 4H).
        wih_p = w_ih[perm].T
        whh_p = w_hh[perm].T
        b_p = (b_ih + b_hh)[perm].reshape(1, 4 * H)
        # Layer-0 input projection stays f32 (hoisted, off the critical path);
        # deeper-layer input projections and all recurrent matmuls use bf16
        # MXU operands (state / gate math stays f32).
        wih_dtype = jnp.float32 if layer == 0 else jnp.bfloat16
        lstm_kern.append((wih_p.astype(wih_dtype),
                          whh_p.astype(jnp.bfloat16),
                          b_p))

    key, k5, k6 = jax.random.split(key, 3)
    fc_w = jax.random.uniform(k5, (1, H), jnp.float32, -k, k)     # (1, H)
    fc_b = jax.random.uniform(k6, (1,), jnp.float32, -k, k).reshape(1, 1)

    kern_params = {"lstm": lstm_kern, "fc_w": fc_w, "fc_b": fc_b}
    ref_params = {"lstm": lstm_ref, "fc_w": fc_w, "fc_b": fc_b}
    return kern_params, ref_params


# ----------------------------------------------------------------------------
# Pure-JAX f32 reference (PyTorch LSTM semantics) for verification
# ----------------------------------------------------------------------------
def reference_forward(x, params):
    h_seq = jnp.transpose(x, (1, 0, 2))  # (T, B, D)
    for (wih_t, whh_t, b) in params["lstm"]:
        H = whh_t.shape[0]
        B = h_seq.shape[1]

        def step(carry, x_t):
            h, c = carry
            gates = x_t @ wih_t + h @ whh_t + b
            i_g = jax.nn.sigmoid(gates[:, 0 * H:1 * H])
            f_g = jax.nn.sigmoid(gates[:, 1 * H:2 * H])
            g_g = jnp.tanh(gates[:, 2 * H:3 * H])
            o_g = jax.nn.sigmoid(gates[:, 3 * H:4 * H])
            c_new = f_g * c + i_g * g_g
            h_new = o_g * jnp.tanh(c_new)
            return (h_new, c_new), h_new

        init = (jnp.zeros((B, H), jnp.float32), jnp.zeros((B, H), jnp.float32))
        _, h_seq = lax.scan(step, init, h_seq)
    h_last = h_seq[-1]
    return h_last @ params["fc_w"].T + params["fc_b"]


# ----------------------------------------------------------------------------
if __name__ == "__main__":
    input_size, hidden_size, num_layers = 4, 32, 2
    batch, seq = 2, 8

    key = jax.random.PRNGKey(0)
    key, kx = jax.random.split(key)
    x = jax.random.normal(kx, (batch, seq, input_size), jnp.float32)

    kern_params, ref_params = init_params(key, input_size, hidden_size, num_layers)

    out = stock_lstm_forward(x, kern_params)
    out = jax.block_until_ready(out)

    ref = reference_forward(x, ref_params)
    assert out.shape == (batch, 1), out.shape
    # Only the recurrent / deeper-layer matmul operands are bf16 (f32
    # accumulation and state), so this tolerance has ample slack.
    np.testing.assert_allclose(np.asarray(out), np.asarray(ref),
                               rtol=3e-2, atol=3e-2)
    print("KERNEL_OK")
</pallas_src>

<mosaic_0001>
module attributes {stable_mosaic.version = 11 : i64} {
  func.func @kernel(%arg0: memref<16x4xf32, #tpu.memory_space<vmem>>, %arg1: memref<4x128xf32, #tpu.memory_space<vmem>>, %arg2: memref<32x128xbf16, #tpu.memory_space<vmem>>, %arg3: memref<1x128xf32, #tpu.memory_space<vmem>>, %arg4: memref<32x128xbf16, #tpu.memory_space<vmem>>, %arg5: memref<32x128xbf16, #tpu.memory_space<vmem>>, %arg6: memref<1x128xf32, #tpu.memory_space<vmem>>, %arg7: memref<1x32xf32, #tpu.memory_space<vmem>>, %arg8: memref<1x1xf32, #tpu.memory_space<vmem>>, %arg9: memref<2x1xf32, #tpu.memory_space<vmem>>) attributes {dimension_semantics = [], scalar_prefetch = 0 : i64, scratch_operands = 0 : i64, tpu.core_type = #tpu.core_type<tc>} {
    %c0 = arith.constant 0 : index
    %c0_0 = arith.constant 0 : index
    %0 = vector.load %arg1[%c0, %c0_0] : memref<4x128xf32, #tpu.memory_space<vmem>>, vector<4x128xf32>
    %c0_1 = arith.constant 0 : index
    %c0_2 = arith.constant 0 : index
    %1 = vector.load %arg2[%c0_1, %c0_2] : memref<32x128xbf16, #tpu.memory_space<vmem>>, vector<32x128xbf16>
    %c0_3 = arith.constant 0 : index
    %c0_4 = arith.constant 0 : index
    %2 = vector.load %arg4[%c0_3, %c0_4] : memref<32x128xbf16, #tpu.memory_space<vmem>>, vector<32x128xbf16>
    %c0_5 = arith.constant 0 : index
    %c0_6 = arith.constant 0 : index
    %3 = vector.load %arg5[%c0_5, %c0_6] : memref<32x128xbf16, #tpu.memory_space<vmem>>, vector<32x128xbf16>
    %c0_7 = arith.constant 0 : index
    %c0_8 = arith.constant 0 : index
    %4 = vector.load %arg3[%c0_7, %c0_8] : memref<1x128xf32, #tpu.memory_space<vmem>>, vector<1x128xf32>
    %c0_9 = arith.constant 0 : index
    %c0_10 = arith.constant 0 : index
    %5 = vector.load %arg6[%c0_9, %c0_10] : memref<1x128xf32, #tpu.memory_space<vmem>>, vector<1x128xf32>
    %6 = vector.shape_cast %5 : vector<1x128xf32> to vector<1x128xf32>
    %7 = vector.broadcast %6 : vector<1x128xf32> to vector<2x128xf32>
    %c0_11 = arith.constant 0 : index
    %c0_12 = arith.constant 0 : index
    %8 = vector.load %arg0[%c0_11, %c0_12] : memref<16x4xf32, #tpu.memory_space<vmem>>, vector<16x4xf32>
    %cst = arith.constant dense<0.000000e+00> : vector<16x128xf32>
    %9 = tpu.matmul %8, %0, %cst {dimension_numbers = #tpu.dot_dimension_numbers<[1], [0], [0], [1], [0, 0, 1, 1], [], []>} : vector<16x4xf32>, vector<4x128xf32>, vector<16x128xf32> -> vector<16x128xf32>
    %10 = vector.broadcast %4 : vector<1x128xf32> to vector<16x128xf32>
    %11 = arith.addf %9, %10 : vector<16x128xf32>
    %12 = vector.shape_cast %11 : vector<16x128xf32> to vector<2x8x128xf32>
    %cst_13 = arith.constant 0.000000e+00 : f32
    %13 = vector.broadcast %cst_13 : f32 to vector<2x32xf32>
    %cst_14 = arith.constant 0.000000e+00 : f32
    %14 = vector.broadcast %cst_14 : f32 to vector<2x32xf32>
    %15 = vector.extract_strided_slice %12 {offsets = [0, 0, 0], sizes = [2, 1, 128], strides = [1, 1, 1]} : vector<2x8x128xf32> to vector<2x1x128xf32>
    %16 = vector.shape_cast %15 : vector<2x1x128xf32> to vector<2x128xf32>
    %17 = vector.extract_strided_slice %16 {offsets = [0, 0], sizes = [2, 96], strides = [1, 1]} : vector<2x128xf32> to vector<2x96xf32>
    %18 = arith.negf %17 : vector<2x96xf32>
    %19 = math.exp %18 : vector<2x96xf32>
    %cst_15 = arith.constant 1.000000e+00 : f32
    %20 = vector.broadcast %cst_15 : f32 to vector<2x96xf32>
    %21 = arith.addf %20, %19 : vector<2x96xf32>
    %22 = arith.divf %20, %21 : vector<2x96xf32>
    %23 = vector.extract_strided_slice %16 {offsets = [0, 96], sizes = [2, 32], strides = [1, 1]} : vector<2x128xf32> to vector<2x32xf32>
    %24 = math.tanh %23 : vector<2x32xf32>
    %25 = vector.extract_strided_slice %22 {offsets = [0, 0], sizes = [2, 32], strides = [1, 1]} : vector<2x96xf32> to vector<2x32xf32>
    %26 = vector.extract_strided_slice %22 {offsets = [0, 32], sizes = [2, 32], strides = [1, 1]} : vector<2x96xf32> to vector<2x32xf32>
    %27 = vector.extract_strided_slice %22 {offsets = [0, 64], sizes = [2, 32], strides = [1, 1]} : vector<2x96xf32> to vector<2x32xf32>
    %28 = arith.mulf %26, %13 : vector<2x32xf32>
    %29 = arith.mulf %25, %24 : vector<2x32xf32>
    %30 = arith.addf %28, %29 : vector<2x32xf32>
    %31 = math.tanh %30 : vector<2x32xf32>
    %32 = arith.mulf %27, %31 : vector<2x32xf32>
    %33 = arith.truncf %32 : vector<2x32xf32> to vector<2x32xbf16>
    %cst_16 = arith.constant dense<0.000000e+00> : vector<2x128xf32>
    %34 = tpu.matmul %33, %2, %cst_16 {dimension_numbers = #tpu.dot_dimension_numbers<[1], [0], [0], [1], [0, 0, 1, 1], [], []>} : vector<2x32xbf16>, vector<32x128xbf16>, vector<2x128xf32> -> vector<2x128xf32>
    %35 = arith.addf %34, %7 : vector<2x128xf32>
    %36 = vector.extract_strided_slice %35 {offsets = [0, 0], sizes = [2, 96], strides = [1, 1]} : vector<2x128xf32> to vector<2x96xf32>
    %37 = arith.negf %36 : vector<2x96xf32>
    %38 = math.exp %37 : vector<2x96xf32>
    %cst_17 = arith.constant 1.000000e+00 : f32
    %39 = vector.broadcast %cst_17 : f32 to vector<2x96xf32>
    %40 = arith.addf %39, %38 : vector<2x96xf32>
    %41 = arith.divf %39, %40 : vector<2x96xf32>
    %42 = vector.extract_strided_slice %35 {offsets = [0, 96], sizes = [2, 32], strides = [1, 1]} : vector<2x128xf32> to vector<2x32xf32>
    %43 = math.tanh %42 : vector<2x32xf32>
    %44 = vector.extract_strided_slice %41 {offsets = [0, 0], sizes = [2, 32], strides = [1, 1]} : vector<2x96xf32> to vector<2x32xf32>
    %45 = vector.extract_strided_slice %41 {offsets = [0, 32], sizes = [2, 32], strides = [1, 1]} : vector<2x96xf32> to vector<2x32xf32>
    %46 = vector.extract_strided_slice %41 {offsets = [0, 64], sizes = [2, 32], strides = [1, 1]} : vector<2x96xf32> to vector<2x32xf32>
    %47 = arith.mulf %45, %14 : vector<2x32xf32>
    %48 = arith.mulf %44, %43 : vector<2x32xf32>
    %49 = arith.addf %47, %48 : vector<2x32xf32>
    %50 = math.tanh %49 : vector<2x32xf32>
    %51 = arith.mulf %46, %50 : vector<2x32xf32>
    %52 = vector.extract_strided_slice %12 {offsets = [0, 1, 0], sizes = [2, 1, 128], strides = [1, 1, 1]} : vector<2x8x128xf32> to vector<2x1x128xf32>
    %53 = vector.shape_cast %52 : vector<2x1x128xf32> to vector<2x128xf32>
    %54 = arith.truncf %32 : vector<2x32xf32> to vector<2x32xbf16>
    %cst_18 = arith.constant dense<0.000000e+00> : vector<2x128xf32>
    %55 = tpu.matmul %54, %1, %cst_18 {dimension_numbers = #tpu.dot_dimension_numbers<[1], [0], [0], [1], [0, 0, 1, 1], [], []>} : vector<2x32xbf16>, vector<32x128xbf16>, vector<2x128xf32> -> vector<2x128xf32>
    %56 = arith.addf %53, %55 : vector<2x128xf32>
    %57 = vector.extract_strided_slice %56 {offsets = [0, 0], sizes = [2, 96], strides = [1, 1]} : vector<2x128xf32> to vector<2x96xf32>
    %58 = arith.negf %57 : vector<2x96xf32>
    %59 = math.exp %58 : vector<2x96xf32>
    %cst_19 = arith.constant 1.000000e+00 : f32
    %60 = vector.broadcast %cst_19 : f32 to vector<2x96xf32>
    %61 = arith.addf %60, %59 : vector<2x96xf32>
    %62 = arith.divf %60, %61 : vector<2x96xf32>
    %63 = vector.extract_strided_slice %56 {offsets = [0, 96], sizes = [2, 32], strides = [1, 1]} : vector<2x128xf32> to vector<2x32xf32>
    %64 = math.tanh %63 : vector<2x32xf32>
    %65 = vector.extract_strided_slice %62 {offsets = [0, 0], sizes = [2, 32], strides = [1, 1]} : vector<2x96xf32> to vector<2x32xf32>
    %66 = vector.extract_strided_slice %62 {offsets = [0, 32], sizes = [2, 32], strides = [1, 1]} : vector<2x96xf32> to vector<2x32xf32>
    %67 = vector.extract_strided_slice %62 {offsets = [0, 64], sizes = [2, 32], strides = [1, 1]} : vector<2x96xf32> to vector<2x32xf32>
    %68 = arith.mulf %66, %30 : vector<2x32xf32>
    %69 = arith.mulf %65, %64 : vector<2x32xf32>
    %70 = arith.addf %68, %69 : vector<2x32xf32>
    %71 = math.tanh %70 : vector<2x32xf32>
    %72 = arith.mulf %67, %71 : vector<2x32xf32>
    %73 = arith.truncf %72 : vector<2x32xf32> to vector<2x32xbf16>
    %cst_20 = arith.constant dense<0.000000e+00> : vector<2x128xf32>
    %74 = tpu.matmul %73, %2, %cst_20 {dimension_numbers = #tpu.dot_dimension_numbers<[1], [0], [0], [1], [0, 0, 1, 1], [], []>} : vector<2x32xbf16>, vector<32x128xbf16>, vector<2x128xf32> -> vector<2x128xf32>
    %75 = arith.addf %74, %7 : vector<2x128xf32>
    %76 = arith.truncf %51 : vector<2x32xf32> to vector<2x32xbf16>
    %cst_21 = arith.constant dense<0.000000e+00> : vector<2x128xf32>
    %77 = tpu.matmul %76, %3, %cst_21 {dimension_numbers = #tpu.dot_dimension_numbers<[1], [0], [0], [1], [0, 0, 1, 1], [], []>} : vector<2x32xbf16>, vector<32x128xbf16>, vector<2x128xf32> -> vector<2x128xf32>
    %78 = arith.addf %75, %77 : vector<2x128xf32>
    %79 = vector.extract_strided_slice %78 {offsets = [0, 0], sizes = [2, 96], strides = [1, 1]} : vector<2x128xf32> to vector<2x96xf32>
    %80 = arith.negf %79 : vector<2x96xf32>
    %81 = math.exp %80 : vector<2x96xf32>
    %cst_22 = arith.constant 1.000000e+00 : f32
    %82 = vector.broadcast %cst_22 : f32 to vector<2x96xf32>
    %83 = arith.addf %82, %81 : vector<2x96xf32>
    %84 = arith.divf %82, %83 : vector<2x96xf32>
    %85 = vector.extract_strided_slice %78 {offsets = [0, 96], sizes = [2, 32], strides = [1, 1]} : vector<2x128xf32> to vector<2x32xf32>
    %86 = math.tanh %85 : vector<2x32xf32>
    %87 = vector.extract_strided_slice %84 {offsets = [0, 0], sizes = [2, 32], strides = [1, 1]} : vector<2x96xf32> to vector<2x32xf32>
    %88 = vector.extract_strided_slice %84 {offsets = [0, 32], sizes = [2, 32], strides = [1, 1]} : vector<2x96xf32> to vector<2x32xf32>
    %89 = vector.extract_strided_slice %84 {offsets = [0, 64], sizes = [2, 32], strides = [1, 1]} : vector<2x96xf32> to vector<2x32xf32>
    %90 = arith.mulf %88, %49 : vector<2x32xf32>
    %91 = arith.mulf %87, %86 : vector<2x32xf32>
    %92 = arith.addf %90, %91 : vector<2x32xf32>
    %93 = math.tanh %92 : vector<2x32xf32>
    %94 = arith.mulf %89, %93 : vector<2x32xf32>
    %95 = vector.extract_strided_slice %12 {offsets = [0, 2, 0], sizes = [2, 1, 128], strides = [1, 1, 1]} : vector<2x8x128xf32> to vector<2x1x128xf32>
    %96 = vector.shape_cast %95 : vector<2x1x128xf32> to vector<2x128xf32>
    %97 = arith.truncf %72 : vector<2x32xf32> to vector<2x32xbf16>
    %cst_23 = arith.constant dense<0.000000e+00> : vector<2x128xf32>
    %98 = tpu.matmul %97, %1, %cst_23 {dimension_numbers = #tpu.dot_dimension_numbers<[1], [0], [0], [1], [0, 0, 1, 1], [], []>} : vector<2x32xbf16>, vector<32x128xbf16>, vector<2x128xf32> -> vector<2x128xf32>
    %99 = arith.addf %96, %98 : vector<2x128xf32>
    %100 = vector.extract_strided_slice %99 {offsets = [0, 0], sizes = [2, 96], strides = [1, 1]} : vector<2x128xf32> to vector<2x96xf32>
    %101 = arith.negf %100 : vector<2x96xf32>
    %102 = math.exp %101 : vector<2x96xf32>
    %cst_24 = arith.constant 1.000000e+00 : f32
    %103 = vector.broadcast %cst_24 : f32 to vector<2x96xf32>
    %104 = arith.addf %103, %102 : vector<2x96xf32>
    %105 = arith.divf %103, %104 : vector<2x96xf32>
    %106 = vector.extract_strided_slice %99 {offsets = [0, 96], sizes = [2, 32], strides = [1, 1]} : vector<2x128xf32> to vector<2x32xf32>
    %107 = math.tanh %106 : vector<2x32xf32>
    %108 = vector.extract_strided_slice %105 {offsets = [0, 0], sizes = [2, 32], strides = [1, 1]} : vector<2x96xf32> to vector<2x32xf32>
    %109 = vector.extract_strided_slice %105 {offsets = [0, 32], sizes = [2, 32], strides = [1, 1]} : vector<2x96xf32> to vector<2x32xf32>
    %110 = vector.extract_strided_slice %105 {offsets = [0, 64], sizes = [2, 32], strides = [1, 1]} : vector<2x96xf32> to vector<2x32xf32>
    %111 = arith.mulf %109, %70 : vector<2x32xf32>
    %112 = arith.mulf %108, %107 : vector<2x32xf32>
    %113 = arith.addf %111, %112 : vector<2x32xf32>
    %114 = math.tanh %113 : vector<2x32xf32>
    %115 = arith.mulf %110, %114 : vector<2x32xf32>
    %116 = arith.truncf %115 : vector<2x32xf32> to vector<2x32xbf16>
    %cst_25 = arith.constant dense<0.000000e+00> : vector<2x128xf32>
    %117 = tpu.matmul %116, %2, %cst_25 {dimension_numbers = #tpu.dot_dimension_numbers<[1], [0], [0], [1], [0, 0, 1, 1], [], []>} : vector<2x32xbf16>, vector<32x128xbf16>, vector<2x128xf32> -> vector<2x128xf32>
    %118 = arith.addf %117, %7 : vector<2x128xf32>
    %119 = arith.truncf %94 : vector<2x32xf32> to vector<2x32xbf16>
    %cst_26 = arith.constant dense<0.000000e+00> : vector<2x128xf32>
    %120 = tpu.matmul %119, %3, %cst_26 {dimension_numbers = #tpu.dot_dimension_numbers<[1], [0], [0], [1], [0, 0, 1, 1], [], []>} : vector<2x32xbf16>, vector<32x128xbf16>, vector<2x128xf32> -> vector<2x128xf32>
    %121 = arith.addf %118, %120 : vector<2x128xf32>
    %122 = vector.extract_strided_slice %121 {offsets = [0, 0], sizes = [2, 96], strides = [1, 1]} : vector<2x128xf32> to vector<2x96xf32>
    %123 = arith.negf %122 : vector<2x96xf32>
    %124 = math.exp %123 : vector<2x96xf32>
    %cst_27 = arith.constant 1.000000e+00 : f32
    %125 = vector.broadcast %cst_27 : f32 to vector<2x96xf32>
    %126 = arith.addf %125, %124 : vector<2x96xf32>
    %127 = arith.divf %125, %126 : vector<2x96xf32>
    %128 = vector.extract_strided_slice %121 {offsets = [0, 96], sizes = [2, 32], strides = [1, 1]} : vector<2x128xf32> to vector<2x32xf32>
    %129 = math.tanh %128 : vector<2x32xf32>
    %130 = vector.extract_strided_slice %127 {offsets = [0, 0], sizes = [2, 32], strides = [1, 1]} : vector<2x96xf32> to vector<2x32xf32>
    %131 = vector.extract_strided_slice %127 {offsets = [0, 32], sizes = [2, 32], strides = [1, 1]} : vector<2x96xf32> to vector<2x32xf32>
    %132 = vector.extract_strided_slice %127 {offsets = [0, 64], sizes = [2, 32], strides = [1, 1]} : vector<2x96xf32> to vector<2x32xf32>
    %133 = arith.mulf %131, %92 : vector<2x32xf32>
    %134 = arith.mulf %130, %129 : vector<2x32xf32>
    %135 = arith.addf %133, %134 : vector<2x32xf32>
    %136 = math.tanh %135 : vector<2x32xf32>
    %137 = arith.mulf %132, %136 : vector<2x32xf32>
    %138 = vector.extract_strided_slice %12 {offsets = [0, 3, 0], sizes = [2, 1, 128], strides = [1, 1, 1]} : vector<2x8x128xf32> to vector<2x1x128xf32>
    %139 = vector.shape_cast %138 : vector<2x1x128xf32> to vector<2x128xf32>
    %140 = arith.truncf %115 : vector<2x32xf32> to vector<2x32xbf16>
    %cst_28 = arith.constant dense<0.000000e+00> : vector<2x128xf32>
    %141 = tpu.matmul %140, %1, %cst_28 {dimension_numbers = #tpu.dot_dimension_numbers<[1], [0], [0], [1], [0, 0, 1, 1], [], []>} : vector<2x32xbf16>, vector<32x128xbf16>, vector<2x128xf32> -> vector<2x128xf32>
    %142 = arith.addf %139, %141 : vector<2x128xf32>
    %143 = vector.extract_strided_slice %142 {offsets = [0, 0], sizes = [2, 96], strides = [1, 1]} : vector<2x128xf32> to vector<2x96xf32>
    %144 = arith.negf %143 : vector<2x96xf32>
    %145 = math.exp %144 : vector<2x96xf32>
    %cst_29 = arith.constant 1.000000e+00 : f32
    %146 = vector.broadcast %cst_29 : f32 to vector<2x96xf32>
    %147 = arith.addf %146, %145 : vector<2x96xf32>
    %148 = arith.divf %146, %147 : vector<2x96xf32>
    %149 = vector.extract_strided_slice %142 {offsets = [0, 96], sizes = [2, 32], strides = [1, 1]} : vector<2x128xf32> to vector<2x32xf32>
    %150 = math.tanh %149 : vector<2x32xf32>
    %151 = vector.extract_strided_slice %148 {offsets = [0, 0], sizes = [2, 32], strides = [1, 1]} : vector<2x96xf32> to vector<2x32xf32>
    %152 = vector.extract_strided_slice %148 {offsets = [0, 32], sizes = [2, 32], strides = [1, 1]} : vector<2x96xf32> to vector<2x32xf32>
    %153 = vector.extract_strided_slice %148 {offsets = [0, 64], sizes = [2, 32], strides = [1, 1]} : vector<2x96xf32> to vector<2x32xf32>
    %154 = arith.mulf %152, %113 : vector<2x32xf32>
    %155 = arith.mulf %151, %150 : vector<2x32xf32>
    %156 = arith.addf %154, %155 : vector<2x32xf32>
    %157 = math.tanh %156 : vector<2x32xf32>
    %158 = arith.mulf %153, %157 : vector<2x32xf32>
    %159 = arith.truncf %158 : vector<2x32xf32> to vector<2x32xbf16>
    %cst_30 = arith.constant dense<0.000000e+00> : vector<2x128xf32>
    %160 = tpu.matmul %159, %2, %cst_30 {dimension_numbers = #tpu.dot_dimension_numbers<[1], [0], [0], [1], [0, 0, 1, 1], [], []>} : vector<2x32xbf16>, vector<32x128xbf16>, vector<2x128xf32> -> vector<2x128xf32>
    %161 = arith.addf %160, %7 : vector<2x128xf32>
    %162 = arith.truncf %137 : vector<2x32xf32> to vector<2x32xbf16>
    %cst_31 = arith.constant dense<0.000000e+00> : vector<2x128xf32>
    %163 = tpu.matmul %162, %3, %cst_31 {dimension_numbers = #tpu.dot_dimension_numbers<[1], [0], [0], [1], [0, 0, 1, 1], [], []>} : vector<2x32xbf16>, vector<32x128xbf16>, vector<2x128xf32> -> vector<2x128xf32>
    %164 = arith.addf %161, %163 : vector<2x128xf32>
    %165 = vector.extract_strided_slice %164 {offsets = [0, 0], sizes = [2, 96], strides = [1, 1]} : vector<2x128xf32> to vector<2x96xf32>
    %166 = arith.negf %165 : vector<2x96xf32>
    %167 = math.exp %166 : vector<2x96xf32>
    %cst_32 = arith.constant 1.000000e+00 : f32
    %168 = vector.broadcast %cst_32 : f32 to vector<2x96xf32>
    %169 = arith.addf %168, %167 : vector<2x96xf32>
    %170 = arith.divf %168, %169 : vector<2x96xf32>
    %171 = vector.extract_strided_slice %164 {offsets = [0, 96], sizes = [2, 32], strides = [1, 1]} : vector<2x128xf32> to vector<2x32xf32>
    %172 = math.tanh %171 : vector<2x32xf32>
    %173 = vector.extract_strided_slice %170 {offsets = [0, 0], sizes = [2, 32], strides = [1, 1]} : vector<2x96xf32> to vector<2x32xf32>
    %174 = vector.extract_strided_slice %170 {offsets = [0, 32], sizes = [2, 32], strides = [1, 1]} : vector<2x96xf32> to vector<2x32xf32>
    %175 = vector.extract_strided_slice %170 {offsets = [0, 64], sizes = [2, 32], strides = [1, 1]} : vector<2x96xf32> to vector<2x32xf32>
    %176 = arith.mulf %174, %135 : vector<2x32xf32>
    %177 = arith.mulf %173, %172 : vector<2x32xf32>
    %178 = arith.addf %176, %177 : vector<2x32xf32>
    %179 = math.tanh %178 : vector<2x32xf32>
    %180 = arith.mulf %175, %179 : vector<2x32xf32>
    %181 = vector.extract_strided_slice %12 {offsets = [0, 4, 0], sizes = [2, 1, 128], strides = [1, 1, 1]} : vector<2x8x128xf32> to vector<2x1x128xf32>
    %182 = vector.shape_cast %181 : vector<2x1x128xf32> to vector<2x128xf32>
    %183 = arith.truncf %158 : vector<2x32xf32> to vector<2x32xbf16>
    %cst_33 = arith.constant dense<0.000000e+00> : vector<2x128xf32>
    %184 = tpu.matmul %183, %1, %cst_33 {dimension_numbers = #tpu.dot_dimension_numbers<[1], [0], [0], [1], [0, 0, 1, 1], [], []>} : vector<2x32xbf16>, vector<32x128xbf16>, vector<2x128xf32> -> vector<2x128xf32>
    %185 = arith.addf %182, %184 : vector<2x128xf32>
    %186 = vector.extract_strided_slice %185 {offsets = [0, 0], sizes = [2, 96], strides = [1, 1]} : vector<2x128xf32> to vector<2x96xf32>
    %187 = arith.negf %186 : vector<2x96xf32>
    %188 = math.exp %187 : vector<2x96xf32>
    %cst_34 = arith.constant 1.000000e+00 : f32
    %189 = vector.broadcast %cst_34 : f32 to vector<2x96xf32>
    %190 = arith.addf %189, %188 : vector<2x96xf32>
    %191 = arith.divf %189, %190 : vector<2x96xf32>
    %192 = vector.extract_strided_slice %185 {offsets = [0, 96], sizes = [2, 32], strides = [1, 1]} : vector<2x128xf32> to vector<2x32xf32>
    %193 = math.tanh %192 : vector<2x32xf32>
    %194 = vector.extract_strided_slice %191 {offsets = [0, 0], sizes = [2, 32], strides = [1, 1]} : vector<2x96xf32> to vector<2x32xf32>
    %195 = vector.extract_strided_slice %191 {offsets = [0, 32], sizes = [2, 32], strides = [1, 1]} : vector<2x96xf32> to vector<2x32xf32>
    %196 = vector.extract_strided_slice %191 {offsets = [0, 64], sizes = [2, 32], strides = [1, 1]} : vector<2x96xf32> to vector<2x32xf32>
    %197 = arith.mulf %195, %156 : vector<2x32xf32>
    %198 = arith.mulf %194, %193 : vector<2x32xf32>
    %199 = arith.addf %197, %198 : vector<2x32xf32>
    %200 = math.tanh %199 : vector<2x32xf32>
    %201 = arith.mulf %196, %200 : vector<2x32xf32>
    %202 = arith.truncf %201 : vector<2x32xf32> to vector<2x32xbf16>
    %cst_35 = arith.constant dense<0.000000e+00> : vector<2x128xf32>
    %203 = tpu.matmul %202, %2, %cst_35 {dimension_numbers = #tpu.dot_dimension_numbers<[1], [0], [0], [1], [0, 0, 1, 1], [], []>} : vector<2x32xbf16>, vector<32x128xbf16>, vector<2x128xf32> -> vector<2x128xf32>
    %204 = arith.addf %203, %7 : vector<2x128xf32>
    %205 = arith.truncf %180 : vector<2x32xf32> to vector<2x32xbf16>
    %cst_36 = arith.constant dense<0.000000e+00> : vector<2x128xf32>
    %206 = tpu.matmul %205, %3, %cst_36 {dimension_numbers = #tpu.dot_dimension_numbers<[1], [0], [0], [1], [0, 0, 1, 1], [], []>} : vector<2x32xbf16>, vector<32x128xbf16>, vector<2x128xf32> -> vector<2x128xf32>
    %207 = arith.addf %204, %206 : vector<2x128xf32>
    %208 = vector.extract_strided_slice %207 {offsets = [0, 0], sizes = [2, 96], strides = [1, 1]} : vector<2x128xf32> to vector<2x96xf32>
    %209 = arith.negf %208 : vector<2x96xf32>
    %210 = math.exp %209 : vector<2x96xf32>
    %cst_37 = arith.constant 1.000000e+00 : f32
    %211 = vector.broadcast %cst_37 : f32 to vector<2x96xf32>
    %212 = arith.addf %211, %210 : vector<2x96xf32>
    %213 = arith.divf %211, %212 : vector<2x96xf32>
    %214 = vector.extract_strided_slice %207 {offsets = [0, 96], sizes = [2, 32], strides = [1, 1]} : vector<2x128xf32> to vector<2x32xf32>
    %215 = math.tanh %214 : vector<2x32xf32>
    %216 = vector.extract_strided_slice %213 {offsets = [0, 0], sizes = [2, 32], strides = [1, 1]} : vector<2x96xf32> to vector<2x32xf32>
    %217 = vector.extract_strided_slice %213 {offsets = [0, 32], sizes = [2, 32], strides = [1, 1]} : vector<2x96xf32> to vector<2x32xf32>
    %218 = vector.extract_strided_slice %213 {offsets = [0, 64], sizes = [2, 32], strides = [1, 1]} : vector<2x96xf32> to vector<2x32xf32>
    %219 = arith.mulf %217, %178 : vector<2x32xf32>
    %220 = arith.mulf %216, %215 : vector<2x32xf32>
    %221 = arith.addf %219, %220 : vector<2x32xf32>
    %222 = math.tanh %221 : vector<2x32xf32>
    %223 = arith.mulf %218, %222 : vector<2x32xf32>
    %224 = vector.extract_strided_slice %12 {offsets = [0, 5, 0], sizes = [2, 1, 128], strides = [1, 1, 1]} : vector<2x8x128xf32> to vector<2x1x128xf32>
    %225 = vector.shape_cast %224 : vector<2x1x128xf32> to vector<2x128xf32>
    %226 = arith.truncf %201 : vector<2x32xf32> to vector<2x32xbf16>
    %cst_38 = arith.constant dense<0.000000e+00> : vector<2x128xf32>
    %227 = tpu.matmul %226, %1, %cst_38 {dimension_numbers = #tpu.dot_dimension_numbers<[1], [0], [0], [1], [0, 0, 1, 1], [], []>} : vector<2x32xbf16>, vector<32x128xbf16>, vector<2x128xf32> -> vector<2x128xf32>
    %228 = arith.addf %225, %227 : vector<2x128xf32>
    %229 = vector.extract_strided_slice %228 {offsets = [0, 0], sizes = [2, 96], strides = [1, 1]} : vector<2x128xf32> to vector<2x96xf32>
    %230 = arith.negf %229 : vector<2x96xf32>
    %231 = math.exp %230 : vector<2x96xf32>
    %cst_39 = arith.constant 1.000000e+00 : f32
    %232 = vector.broadcast %cst_39 : f32 to vector<2x96xf32>
    %233 = arith.addf %232, %231 : vector<2x96xf32>
    %234 = arith.divf %232, %233 : vector<2x96xf32>
    %235 = vector.extract_strided_slice %228 {offsets = [0, 96], sizes = [2, 32], strides = [1, 1]} : vector<2x128xf32> to vector<2x32xf32>
    %236 = math.tanh %235 : vector<2x32xf32>
    %237 = vector.extract_strided_slice %234 {offsets = [0, 0], sizes = [2, 32], strides = [1, 1]} : vector<2x96xf32> to vector<2x32xf32>
    %238 = vector.extract_strided_slice %234 {offsets = [0, 32], sizes = [2, 32], strides = [1, 1]} : vector<2x96xf32> to vector<2x32xf32>
    %239 = vector.extract_strided_slice %234 {offsets = [0, 64], sizes = [2, 32], strides = [1, 1]} : vector<2x96xf32> to vector<2x32xf32>
    %240 = arith.mulf %238, %199 : vector<2x32xf32>
    %241 = arith.mulf %237, %236 : vector<2x32xf32>
    %242 = arith.addf %240, %241 : vector<2x32xf32>
    %243 = math.tanh %242 : vector<2x32xf32>
    %244 = arith.mulf %239, %243 : vector<2x32xf32>
    %245 = arith.truncf %244 : vector<2x32xf32> to vector<2x32xbf16>
    %cst_40 = arith.constant dense<0.000000e+00> : vector<2x128xf32>
    %246 = tpu.matmul %245, %2, %cst_40 {dimension_numbers = #tpu.dot_dimension_numbers<[1], [0], [0], [1], [0, 0, 1, 1], [], []>} : vector<2x32xbf16>, vector<32x128xbf16>, vector<2x128xf32> -> vector<2x128xf32>
    %247 = arith.addf %246, %7 : vector<2x128xf32>
    %248 = arith.truncf %223 : vector<2x32xf32> to vector<2x32xbf16>
    %cst_41 = arith.constant dense<0.000000e+00> : vector<2x128xf32>
    %249 = tpu.matmul %248, %3, %cst_41 {dimension_numbers = #tpu.dot_dimension_numbers<[1], [0], [0], [1], [0, 0, 1, 1], [], []>} : vector<2x32xbf16>, vector<32x128xbf16>, vector<2x128xf32> -> vector<2x128xf32>
    %250 = arith.addf %247, %249 : vector<2x128xf32>
    %251 = vector.extract_strided_slice %250 {offsets = [0, 0], sizes = [2, 96], strides = [1, 1]} : vector<2x128xf32> to vector<2x96xf32>
    %252 = arith.negf %251 : vector<2x96xf32>
    %253 = math.exp %252 : vector<2x96xf32>
    %cst_42 = arith.constant 1.000000e+00 : f32
    %254 = vector.broadcast %cst_42 : f32 to vector<2x96xf32>
    %255 = arith.addf %254, %253 : vector<2x96xf32>
    %256 = arith.divf %254, %255 : vector<2x96xf32>
    %257 = vector.extract_strided_slice %250 {offsets = [0, 96], sizes = [2, 32], strides = [1, 1]} : vector<2x128xf32> to vector<2x32xf32>
    %258 = math.tanh %257 : vector<2x32xf32>
    %259 = vector.extract_strided_slice %256 {offsets = [0, 0], sizes = [2, 32], strides = [1, 1]} : vector<2x96xf32> to vector<2x32xf32>
    %260 = vector.extract_strided_slice %256 {offsets = [0, 32], sizes = [2, 32], strides = [1, 1]} : vector<2x96xf32> to vector<2x32xf32>
    %261 = vector.extract_strided_slice %256 {offsets = [0, 64], sizes = [2, 32], strides = [1, 1]} : vector<2x96xf32> to vector<2x32xf32>
    %262 = arith.mulf %260, %221 : vector<2x32xf32>
    %263 = arith.mulf %259, %258 : vector<2x32xf32>
    %264 = arith.addf %262, %263 : vector<2x32xf32>
    %265 = math.tanh %264 : vector<2x32xf32>
    %266 = arith.mulf %261, %265 : vector<2x32xf32>
    %267 = vector.extract_strided_slice %12 {offsets = [0, 6, 0], sizes = [2, 1, 128], strides = [1, 1, 1]} : vector<2x8x128xf32> to vector<2x1x128xf32>
    %268 = vector.shape_cast %267 : vector<2x1x128xf32> to vector<2x128xf32>
    %269 = arith.truncf %244 : vector<2x32xf32> to vector<2x32xbf16>
    %cst_43 = arith.constant dense<0.000000e+00> : vector<2x128xf32>
    %270 = tpu.matmul %269, %1, %cst_43 {dimension_numbers = #tpu.dot_dimension_numbers<[1], [0], [0], [1], [0, 0, 1, 1], [], []>} : vector<2x32xbf16>, vector<32x128xbf16>, vector<2x128xf32> -> vector<2x128xf32>
    %271 = arith.addf %268, %270 : vector<2x128xf32>
    %272 = vector.extract_strided_slice %271 {offsets = [0, 0], sizes = [2, 96], strides = [1, 1]} : vector<2x128xf32> to vector<2x96xf32>
    %273 = arith.negf %272 : vector<2x96xf32>
    %274 = math.exp %273 : vector<2x96xf32>
    %cst_44 = arith.constant 1.000000e+00 : f32
    %275 = vector.broadcast %cst_44 : f32 to vector<2x96xf32>
    %276 = arith.addf %275, %274 : vector<2x96xf32>
    %277 = arith.divf %275, %276 : vector<2x96xf32>
    %278 = vector.extract_strided_slice %271 {offsets = [0, 96], sizes = [2, 32], strides = [1, 1]} : vector<2x128xf32> to vector<2x32xf32>
    %279 = math.tanh %278 : vector<2x32xf32>
    %280 = vector.extract_strided_slice %277 {offsets = [0, 0], sizes = [2, 32], strides = [1, 1]} : vector<2x96xf32> to vector<2x32xf32>
    %281 = vector.extract_strided_slice %277 {offsets = [0, 32], sizes = [2, 32], strides = [1, 1]} : vector<2x96xf32> to vector<2x32xf32>
    %282 = vector.extract_strided_slice %277 {offsets = [0, 64], sizes = [2, 32], strides = [1, 1]} : vector<2x96xf32> to vector<2x32xf32>
    %283 = arith.mulf %281, %242 : vector<2x32xf32>
    %284 = arith.mulf %280, %279 : vector<2x32xf32>
    %285 = arith.addf %283, %284 : vector<2x32xf32>
    %286 = math.tanh %285 : vector<2x32xf32>
    %287 = arith.mulf %282, %286 : vector<2x32xf32>
    %288 = arith.truncf %287 : vector<2x32xf32> to vector<2x32xbf16>
    %cst_45 = arith.constant dense<0.000000e+00> : vector<2x128xf32>
    %289 = tpu.matmul %288, %2, %cst_45 {dimension_numbers = #tpu.dot_dimension_numbers<[1], [0], [0], [1], [0, 0, 1, 1], [], []>} : vector<2x32xbf16>, vector<32x128xbf16>, vector<2x128xf32> -> vector<2x128xf32>
    %290 = arith.addf %289, %7 : vector<2x128xf32>
    %291 = arith.truncf %266 : vector<2x32xf32> to vector<2x32xbf16>
    %cst_46 = arith.constant dense<0.000000e+00> : vector<2x128xf32>
    %292 = tpu.matmul %291, %3, %cst_46 {dimension_numbers = #tpu.dot_dimension_numbers<[1], [0], [0], [1], [0, 0, 1, 1], [], []>} : vector<2x32xbf16>, vector<32x128xbf16>, vector<2x128xf32> -> vector<2x128xf32>
    %293 = arith.addf %290, %292 : vector<2x128xf32>
    %294 = vector.extract_strided_slice %293 {offsets = [0, 0], sizes = [2, 96], strides = [1, 1]} : vector<2x128xf32> to vector<2x96xf32>
    %295 = arith.negf %294 : vector<2x96xf32>
    %296 = math.exp %295 : vector<2x96xf32>
    %cst_47 = arith.constant 1.000000e+00 : f32
    %297 = vector.broadcast %cst_47 : f32 to vector<2x96xf32>
    %298 = arith.addf %297, %296 : vector<2x96xf32>
    %299 = arith.divf %297, %298 : vector<2x96xf32>
    %300 = vector.extract_strided_slice %293 {offsets = [0, 96], sizes = [2, 32], strides = [1, 1]} : vector<2x128xf32> to vector<2x32xf32>
    %301 = math.tanh %300 : vector<2x32xf32>
    %302 = vector.extract_strided_slice %299 {offsets = [0, 0], sizes = [2, 32], strides = [1, 1]} : vector<2x96xf32> to vector<2x32xf32>
    %303 = vector.extract_strided_slice %299 {offsets = [0, 32], sizes = [2, 32], strides = [1, 1]} : vector<2x96xf32> to vector<2x32xf32>
    %304 = vector.extract_strided_slice %299 {offsets = [0, 64], sizes = [2, 32], strides = [1, 1]} : vector<2x96xf32> to vector<2x32xf32>
    %305 = arith.mulf %303, %264 : vector<2x32xf32>
    %306 = arith.mulf %302, %301 : vector<2x32xf32>
    %307 = arith.addf %305, %306 : vector<2x32xf32>
    %308 = math.tanh %307 : vector<2x32xf32>
    %309 = arith.mulf %304, %308 : vector<2x32xf32>
    %310 = vector.extract_strided_slice %12 {offsets = [0, 7, 0], sizes = [2, 1, 128], strides = [1, 1, 1]} : vector<2x8x128xf32> to vector<2x1x128xf32>
    %311 = vector.shape_cast %310 : vector<2x1x128xf32> to vector<2x128xf32>
    %312 = arith.truncf %287 : vector<2x32xf32> to vector<2x32xbf16>
    %cst_48 = arith.constant dense<0.000000e+00> : vector<2x128xf32>
    %313 = tpu.matmul %312, %1, %cst_48 {dimension_numbers = #tpu.dot_dimension_numbers<[1], [0], [0], [1], [0, 0, 1, 1], [], []>} : vector<2x32xbf16>, vector<32x128xbf16>, vector<2x128xf32> -> vector<2x128xf32>
    %314 = arith.addf %311, %313 : vector<2x128xf32>
    %315 = vector.extract_strided_slice %314 {offsets = [0, 0], sizes = [2, 96], strides = [1, 1]} : vector<2x128xf32> to vector<2x96xf32>
    %316 = arith.negf %315 : vector<2x96xf32>
    %317 = math.exp %316 : vector<2x96xf32>
    %cst_49 = arith.constant 1.000000e+00 : f32
    %318 = vector.broadcast %cst_49 : f32 to vector<2x96xf32>
    %319 = arith.addf %318, %317 : vector<2x96xf32>
    %320 = arith.divf %318, %319 : vector<2x96xf32>
    %321 = vector.extract_strided_slice %314 {offsets = [0, 96], sizes = [2, 32], strides = [1, 1]} : vector<2x128xf32> to vector<2x32xf32>
    %322 = math.tanh %321 : vector<2x32xf32>
    %323 = vector.extract_strided_slice %320 {offsets = [0, 0], sizes = [2, 32], strides = [1, 1]} : vector<2x96xf32> to vector<2x32xf32>
    %324 = vector.extract_strided_slice %320 {offsets = [0, 32], sizes = [2, 32], strides = [1, 1]} : vector<2x96xf32> to vector<2x32xf32>
    %325 = vector.extract_strided_slice %320 {offsets = [0, 64], sizes = [2, 32], strides = [1, 1]} : vector<2x96xf32> to vector<2x32xf32>
    %326 = arith.mulf %324, %285 : vector<2x32xf32>
    %327 = arith.mulf %323, %322 : vector<2x32xf32>
    %328 = arith.addf %326, %327 : vector<2x32xf32>
    %329 = math.tanh %328 : vector<2x32xf32>
    %330 = arith.mulf %325, %329 : vector<2x32xf32>
    %331 = arith.truncf %330 : vector<2x32xf32> to vector<2x32xbf16>
    %cst_50 = arith.constant dense<0.000000e+00> : vector<2x128xf32>
    %332 = tpu.matmul %331, %2, %cst_50 {dimension_numbers = #tpu.dot_dimension_numbers<[1], [0], [0], [1], [0, 0, 1, 1], [], []>} : vector<2x32xbf16>, vector<32x128xbf16>, vector<2x128xf32> -> vector<2x128xf32>
    %333 = arith.addf %332, %7 : vector<2x128xf32>
    %334 = arith.truncf %309 : vector<2x32xf32> to vector<2x32xbf16>
    %cst_51 = arith.constant dense<0.000000e+00> : vector<2x128xf32>
    %335 = tpu.matmul %334, %3, %cst_51 {dimension_numbers = #tpu.dot_dimension_numbers<[1], [0], [0], [1], [0, 0, 1, 1], [], []>} : vector<2x32xbf16>, vector<32x128xbf16>, vector<2x128xf32> -> vector<2x128xf32>
    %336 = arith.addf %333, %335 : vector<2x128xf32>
    %337 = vector.extract_strided_slice %336 {offsets = [0, 0], sizes = [2, 96], strides = [1, 1]} : vector<2x128xf32> to vector<2x96xf32>
    %338 = arith.negf %337 : vector<2x96xf32>
    %339 = math.exp %338 : vector<2x96xf32>
    %cst_52 = arith.constant 1.000000e+00 : f32
    %340 = vector.broadcast %cst_52 : f32 to vector<2x96xf32>
    %341 = arith.addf %340, %339 : vector<2x96xf32>
    %342 = arith.divf %340, %341 : vector<2x96xf32>
    %343 = vector.extract_strided_slice %336 {offsets = [0, 96], sizes = [2, 32], strides = [1, 1]} : vector<2x128xf32> to vector<2x32xf32>
    %344 = math.tanh %343 : vector<2x32xf32>
    %345 = vector.extract_strided_slice %342 {offsets = [0, 0], sizes = [2, 32], strides = [1, 1]} : vector<2x96xf32> to vector<2x32xf32>
    %346 = vector.extract_strided_slice %342 {offsets = [0, 32], sizes = [2, 32], strides = [1, 1]} : vector<2x96xf32> to vector<2x32xf32>
    %347 = vector.extract_strided_slice %342 {offsets = [0, 64], sizes = [2, 32], strides = [1, 1]} : vector<2x96xf32> to vector<2x32xf32>
    %348 = arith.mulf %346, %307 : vector<2x32xf32>
    %349 = arith.mulf %345, %344 : vector<2x32xf32>
    %350 = arith.addf %348, %349 : vector<2x32xf32>
    %351 = math.tanh %350 : vector<2x32xf32>
    %352 = arith.mulf %347, %351 : vector<2x32xf32>
    %c0_53 = arith.constant 0 : index
    %c0_54 = arith.constant 0 : index
    %353 = vector.load %arg7[%c0_53, %c0_54] : memref<1x32xf32, #tpu.memory_space<vmem>>, vector<1x32xf32>
    %354 = vector.broadcast %353 : vector<1x32xf32> to vector<2x32xf32>
    %355 = arith.mulf %352, %354 : vector<2x32xf32>
    %cst_55 = arith.constant dense<0.000000e+00> : vector<2xf32>
    %356 = vector.multi_reduction <add>, %355, %cst_55 [1] : vector<2x32xf32> to vector<2xf32>
    %357 = vector.shape_cast %356 : vector<2xf32> to vector<2x1xf32>
    %c0_56 = arith.constant 0 : index
    %c0_57 = arith.constant 0 : index
    %358 = vector.load %arg8[%c0_56, %c0_57] : memref<1x1xf32, #tpu.memory_space<vmem>>, vector<1x1xf32>
    %359 = vector.broadcast %358 : vector<1x1xf32> to vector<2x1xf32>
    %360 = arith.addf %357, %359 : vector<2x1xf32>
    %c0_58 = arith.constant 0 : index
    %c0_59 = arith.constant 0 : index
    %361 = vector.load %arg9[%c0_58, %c0_59] : memref<2x1xf32, #tpu.memory_space<vmem>>, vector<2x1xf32>
    tpu.vector_store %arg9[%c0_58, %c0_59], %360 {strides = array<i32>} : memref<2x1xf32, #tpu.memory_space<vmem>>, vector<2x1xf32>,
    return
  }
}

</mosaic_0001>

<bundles_post_ra>
// kernel: stock_lstm_forward.1
= control target key start
LH: loop header
LB: loop body
LE: loop exit
PB: predicated region body
PF: predicated region fallthrough
CT: control target
= control target key end

     0   :  { %s3089_s0 = inlined_call_operand.vmem [shape: f32[16,4], index: 0, kind: input, shape index: {}]   ;;  %s3090_s1 = inlined_call_operand.hbm [shape: f32[4,128], index: 1, kind: input, shape index: {}]   ;;  %s3091_s2 = inlined_call_operand.vmem [shape: bf16[32,128], index: 2, kind: input, shape index: {}]   ;;  %s3092_s3 = inlined_call_operand.vmem [shape: f32[1,128], index: 3, kind: input, shape index: {}]   ;;  %s3093_s4 = inlined_call_operand.vmem [shape: bf16[32,128], index: 4, kind: input, shape index: {}]   ;;  %s3094_s5 = inlined_call_operand.vmem [shape: bf16[32,128], index: 5, kind: input, shape index: {}]   ;;  %s3095_s6 = inlined_call_operand.vmem [shape: f32[1,128], index: 6, kind: input, shape index: {}]   ;;  %s3096_s7 = inlined_call_operand.hbm [shape: f32[1,32], index: 7, kind: input, shape index: {}]   ;;  %s3097_s8 = inlined_call_operand.<no memory space> [shape: f32[1,1], index: 8, kind: input, shape index: {}]   ;;  %s3098_s9 = inlined_call_operand.vmem [shape: f32[2,1], index: 9, kind: output, shape index: {}]  }
   0x1   :  { %v14_v0 = vstv %s3097_s8 }
   0x2   :  { %15 = vst [vmem:[#allocation2] sm:$0x1] %v14_v0 }
   0x3   :  { %16 = vsyncpa [#allocation4], 0 }
   0x4   :  { %17 = vsyncpa [#allocation6], 0  ;;  %s2569_s11 = smov [#allocation3]   ;;  %s2570_s13 = smov [#allocation5]  }
   0x5   :  { %s26_s12 = sshll.u32 %s2569_s11, 4  ;;  %s46_s14 = sshll.u32 %s2570_s13, 4  ;;  %s27_s12 = int_to_ptr.vmem [resolvable:$true] %s26_s12  ;;  %s47_s14 = int_to_ptr.vmem [resolvable:$true] %s46_s14 }
   0x6   :  { %s2521_s17 = scalar_lea.hbm %s3090_s1, 64 }
   0x7   :  { %p2522_p0 = scmp.ne.s32.totalorder %s3090_s1, %s2521_s17  ;;  %p2525_p1 = scmp.lt.u32.totalorder %s2521_s17, %s3090_s1 }
   0x9   :  { %p2527_p2 = pnand %p2525_p1, %p2522_p0 }
   0xb   :  { %2530 = shalt.err (!%p2527_p2)
}
   0xc   :  { %s2531_s8 = scalar_lea.vmem %s27_s12, 64  ;;  %p2536_p4 = scmp.lt.s32.totalorder %s27_s12, %s27_s12 }
   0xd   :  { %p2532_p3 = scmp.ne.s32.totalorder %s27_s12, %s2531_s8  ;;  %p2537_p5 = scmp.lt.s32.totalorder %s2531_s8, %s2531_s8 }
   0xf   :  { %p2538_p6 = por %p2537_p5, %p2536_p4 }
  0x11   :  { %p2539_p7 = pnand %p2538_p6, %p2532_p3 }
  0x13   :  { %2542 = shalt.err (!%p2539_p7)
}
  0x14   :  { %29 = dma.hbm_to_vmem [thread:$0]  %s3090_s1, 64, %s27_s12, [#allocation4]  }
  0x15   :  { %s2543_s26 = scalar_lea.hbm %s3096_s7, 16 }
  0x16   :  { %p2544_p8 = scmp.ne.s32.totalorder %s3096_s7, %s2543_s26  ;;  %p2547_p9 = scmp.lt.u32.totalorder %s2543_s26, %s3096_s7 }
  0x18   :  { %p2549_p10 = pnand %p2547_p9, %p2544_p8 }
  0x1a   :  { %2552 = shalt.err (!%p2549_p10)
}
  0x1b   :  { %s2553_s10 = scalar_lea.vmem %s47_s14, 16  ;;  %s2557_s11 = scalar_lea.vmem %s47_s14, 32 }
  0x1c   :  { %p2554_p11 = scmp.ne.s32.totalorder %s47_s14, %s2553_s10  ;;  %p2558_p12 = scmp.lt.s32.totalorder %s47_s14, %s47_s14 }
  0x1d   :  { %p2559_p13 = scmp.lt.s32.totalorder %s2557_s11, %s2553_s10 }
  0x1f   :  { %p2560_p0 = por %p2559_p13, %p2558_p12 }
  0x21   :  { %p2561_p1 = pnand %p2560_p0, %p2554_p11 }
  0x23   :  { %2564 = shalt.err (!%p2561_p1)
}
  0x24   :  { %49 = dma.hbm_to_vmem [thread:$0]  %s3096_s7, 16, %s47_s14, [#allocation6]  }
  0x25   :  { %2565 = dma.done.wait [#allocation4], 64  }
  0x26   :  { %2566 = vsyncadd [#allocation4], 4294967232 }
  0x27   :  { %2567 = dma.done.wait [#allocation6], 16  }
  0x28   :  { %2568 = vsyncadd [#allocation6], 4294967280  ;;  %vm95_vm0 = vcmask 1043456   ;;  %vm88_vm1 = vcmask 31744   ;;  %v59_v1 = vld [vmem:[#allocation3] sm:$0xf] }
  0x29   :  { %v80_v2 = vld [vmem:[%s3089_s0] sm:$0xff]  ;;  %v81_v3 = vld [vmem:[%s3089_s0 + $0x8] sm:$0xff]  ;;  %2094 = vmatprep.subr.msk.mxu0 %vm95_vm0, %v59_v1  ;;  %s2571_s0 = smov 32   ;;  %v2572_v31 = vmov 0.0   ;;  %vm2573_vm2 = vmmov 0   ;;  %vm229_vm3 = vcmask 1041409  }
  0x2a   :  { %2096 = vmatprep.mubr.msk.f32.mxu0 %vm88_vm1, %v80_v2  ;;  %2095 = vmatpush3.msk.msra.mxu0 %vm95_vm0, %v59_v1  ;;  %v1967_v4 = vld [vmem:[%s3092_s3] ss:$0 sm:$0xff]  ;;  %v2692_v32 = vld [vmem:[%s3093_s4 + $0x8] sm:$0xff]   ;;  %s2574_s21 = smov 64   ;;  %vm246_vm4 = vcmask 261120   ;;  %vm1946_vm5 = vcmask 254976  }
  0x2b   :  { %2097 = vmatmul.mubr.msk.f32.vlgmr.msra.gmra.mrb[0].mxu0 %vm88_vm1, %v81_v3  ;;  %v2683_v30 = vld [vmem:[%s3093_s4] sm:$0xff]   ;;  %2099 = vmatprep.subr.bf16.mxu0 %v2572_v31  ;;  %v2717_v47 = vld [vmem:[%s3091_s2 + $0x8] sm:$0xff]   ;;  %vm1958_vm6 = vcmask 1024  }
  0x2c   :  { %2103 = vmatprep.mubr.msk.bf16.mxu0 %vm2573_vm2, %v2572_v31  ;;  %2100 = vmatpush3.bf16.msra.mxu0 %v2683_v30  ;;  %v2710_v45 = vld [vmem:[%s3091_s2] sm:$0xff]  }
  0x2d   :  { %2115 = vmatprep.subr.bf16.mxu1 %v2572_v31  ;;  %2101 = vmatprep.subr.bf16.mxu0 %v2572_v31  ;;  %v2738_v3 = vld [vmem:[%s3095_s6] ss:$0 sm:$0xff] }
  0x2e   :  { %2116 = vmatpush3.bf16.msra.mxu1 %v2683_v30  ;;  %2119 = vmatprep.mubr.msk.bf16.mxu1 %vm2573_vm2, %v2572_v31 }
  0x2f   :  { %2117 = vmatprep.subr.bf16.mxu1 %v2572_v31 }
  0x30   :  { %2102 = vmatpush3.bf16.msra.mxu0 %v2692_v32 }
  0x31   :  { %2107 = vmatprep.subr.bf16.mxu0 %v2572_v31 }
  0x32   :  { %2118 = vmatpush3.bf16.msra.mxu1 %v2692_v32 }
  0x33   :  { %2123 = vmatprep.subr.bf16.mxu1 %v2572_v31 }
  0xfe   :  { %v2098_v5 = vpop.f32.mrb[0].mxu0 }
  0xff   :  { %v2661_v6 = vadd.f32 %v2098_v5, %v1967_v4  ;;  %v165_v7 = vpop.f32.mrb[1].mxu0 }
 0x100   :  { %v2663_v8 = vadd.f32 %v1967_v4, %v165_v7 }
 0x101   :  { %2322 = vtanh.f32 %v2661_v6  ;;  %v1972_v11 = vmul.f32 -1.442695, %v2661_v6 }
 0x102   :  { %2324 = vtanh.f32 %v2663_v8  ;;  %v1971_v12 = vmul.f32 -1.442695, %v2663_v8 }
 0x103   :  { %2326 = vpow2.f32 %v1972_v11 }
 0x104   :  { %2328 = vpow2.f32 %v1971_v12 }
 0x10b   :  { %v2323_v9 = vpop.eup %2322 }
 0x10c   :  { %194 = vrot.lane.b32.xlu0 %v2323_v9, %s2571_s0  ;;  %v2325_v10 = vpop.eup %2324 }
 0x10d   :  { %v2327_v13 = vpop.eup %2326 }
 0x10e   :  { %v181_v14 = vadd.f32 1.0, %v2327_v13  ;;  %v2329_v15 = vpop.eup %2328 }
 0x10f   :  { %v180_v16 = vadd.f32 1.0, %v2329_v15 }
 0x110   :  { %192 = vrot.lane.b32.xlu0 %v2325_v10, %s2571_s0  ;;  %2330 = vrcp.f32 %v181_v14 }
 0x111   :  { %2332 = vrcp.f32 %v180_v16 }
 0x11a   :  { %v2331_v17 = vpop.eup %2330 }
 0x11b   :  { %v2333_v20 = vpop.eup %2332  ;;  %v189_v23 = vmul.f32 0.0, %v2331_v17 }
 0x11c   :  { %v188_v26 = vmul.f32 0.0, %v2333_v20 }
 0x17e   :  { %v195_v18 = vpop.permute.xlu0 %194 }
 0x17f   :  { %v199_v19 = vmul.f32 %v2331_v17, %v195_v18 }
 0x181   :  { %204 = vrot.lane.b32.xlu1 %v199_v19, %s2571_s0 }
 0x182   :  { %v193_v21 = vpop.permute.xlu0 %192 }
 0x183   :  { %v198_v22 = vmul.f32 %v2333_v20, %v193_v21 }
 0x185   :  { %202 = vrot.lane.b32.xlu1 %v198_v22, %s2571_s0 }
 0x1f3   :  { %v205_v24 = vpop.permute.xlu1 %204 }
 0x1f4   :  { %v2673_v25 = vadd.f32 %v205_v24, %v189_v23 }
 0x1f6   :  { %2334 = vtanh.f32 %v2673_v25  ;;  %v389_v18 = vrot.slane %v2673_v25, 7 }
 0x1f7   :  { %v203_v27 = vpop.permute.xlu1 %202 }
 0x1f8   :  { %v2676_v28 = vadd.f32 %v203_v27, %v188_v26 }
 0x1fa   :  { %2336 = vtanh.f32 %v2676_v28 }
 0x200   :  { %v2335_v29 = vpop.eup %2334 }
 0x201   :  { %216 = vrot.lane.b32.xlu0 %v2335_v29, %s2571_s0 }
 0x204   :  { %v2337_v33 = vpop.eup %2336 }
 0x205   :  { %214 = vrot.lane.b32.xlu1 %v2337_v33, %s2571_s0 }
 0x273   :  { %v217_v34 = vpop.permute.xlu0 %216 }
 0x274   :  { %v221_v35 = vmul.f32 %v2331_v17, %v217_v34  ;;  %v388_v17 = vrot.slane %v2676_v28, 7 }
 0x276   :  { %v223_v36 = vpack.c.bf16 %v221_v35, %v221_v35 }
 0x277   :  { %v215_v37 = vpop.permute.xlu1 %214 }
 0x278   :  { %v227_v38 = vunpack.c.l.b16 %v223_v36  ;;  %v220_v39 = vmul.f32 %v2333_v20, %v215_v37 }
 0x27a   :  { %v222_v40 = vpack.c.bf16 %v220_v39, %v220_v39  ;;  %v228_v41 = vrot.slane %v227_v38, 7 }
 0x27c   :  { %v226_v42 = vunpack.c.l.b16 %v222_v40 }
 0x27e   :  { %v230_v43 = vsel %vm229_vm3, %v228_v41, %v226_v42 }
 0x27f   :  { %v231_v44 = vpack.c.b16 %v230_v43, %v230_v43 }
 0x281   :  { %232 = vrot.lane.b32.xlu0 %v231_v44, %s2574_s21 }
 0x2f3   :  { %v233_v46 = vpop.permute.xlu0 %232 }
 0x2f4   :  { %2104 = vmatmul.mubr.msk.bf16.vlgmr.msra.gmra.mrb[4].mxu0 %vm246_vm4, %v233_v46 }
 0x2f5   :  { %2108 = vmatpush3.bf16.msra.mxu0 %v2710_v45  ;;  %2111 = vmatprep.mubr.msk.bf16.mxu0 %vm2573_vm2, %v2572_v31 }
 0x2f6   :  { %2109 = vmatprep.subr.bf16.mxu0 %v2572_v31 }
 0x2f9   :  { %2110 = vmatpush3.bf16.msra.mxu0 %v2717_v47 }
 0x2fa   :  { %2131 = vmatprep.subr.bf16.mxu0 %v2572_v31 }
 0x2fc   :  { %2112 = vmatmul.mubr.msk.bf16.vlgmr.msra.gmra.mrb[8].mxu0 %vm246_vm4, %v233_v46 }
 0x2fd   :  { %2132 = vmatpush3.bf16.msra.mxu0 %v2710_v45  ;;  %2135 = vmatprep.mubr.msk.bf16.mxu0 %vm2573_vm2, %v2572_v31 }
 0x2fe   :  { %2133 = vmatprep.subr.bf16.mxu0 %v2572_v31 }
 0x301   :  { %2134 = vmatpush3.bf16.msra.mxu0 %v2717_v47 }
 0x302   :  { %2139 = vmatprep.subr.bf16.mxu0 %v2572_v31 }
 0x3c7   :  { %v284_v48 = vpop.f32.mrb[4].mxu0 }
 0x3c8   :  { %v2105_v49 = vpop.f32.mrb[5].mxu0  ;;  %v285_v4 = vadd.f32 %v2738_v3, %v284_v48 }
 0x3c9   :  { %v287_v50 = vpop.f32.mrb[6].mxu0 }
 0x3ca   :  { %v2106_v51 = vpop.f32.mrb[7].mxu0  ;;  %v1976_v14 = vmul.f32 -1.442695, %v285_v4 }
 0x3cf   :  { %v360_v52 = vpop.f32.mrb[8].mxu0 }
 0x3d0   :  { %v367_v53 = vrot.slane %v360_v52, 7  ;;  %v371_v54 = vadd.f32 %v360_v52, %v2661_v6  ;;  %v2113_v55 = vpop.f32.mrb[9].mxu0 }
 0x3d1   :  { %v363_v56 = vpop.f32.mrb[10].mxu0  ;;  %v2773_v55 = vld [vmem:[%s3094_s5 + $0x8] sm:$0xff]  }
 0x3d2   :  { %v370_v57 = vadd.f32 %v367_v53, %v2663_v8  ;;  %2338 = vtanh.f32 %v371_v54  ;;  %v2114_v58 = vpop.f32.mrb[11].mxu0  ;;  %v1981_v61 = vmul.f32 -1.442695, %v371_v54  ;;  %v2765_v53 = vld [vmem:[%s3094_s5] sm:$0xff]  }
 0x3d4   :  { %2340 = vtanh.f32 %v370_v57  ;;  %v1980_v62 = vmul.f32 -1.442695, %v370_v57 }
 0x3d5   :  { %2342 = vpow2.f32 %v1981_v61 }
 0x3d6   :  { %2344 = vpow2.f32 %v1980_v62 }
 0x3dc   :  { %v2339_v59 = vpop.eup %2338 }
 0x3dd   :  { %398 = vrot.lane.b32.xlu0 %v2339_v59, %s2571_s0 }
 0x3de   :  { %v2341_v60 = vpop.eup %2340 }
 0x3df   :  { %396 = vrot.lane.b32.xlu1 %v2341_v60, %s2571_s0  ;;  %v2343_v63 = vpop.eup %2342 }
 0x3e0   :  { %v2345_v0 = vpop.eup %2344  ;;  %v379_v1 = vadd.f32 1.0, %v2343_v63 }
 0x3e1   :  { %v378_v2 = vadd.f32 1.0, %v2345_v0 }
 0x3e2   :  { %2346 = vrcp.f32 %v379_v1 }
 0x3e3   :  { %2348 = vrcp.f32 %v378_v2 }
 0x3e4   :  { %2350 = vtanh.f32 %v285_v4 }
 0x3e5   :  { %2352 = vpow2.f32 %v1976_v14 }
 0x3ec   :  { %v2347_v5 = vpop.eup %2346 }
 0x3ed   :  { %v2349_v10 = vpop.eup %2348  ;;  %v393_v22 = vmul.f32 %v2347_v5, %v389_v18 }
 0x3ee   :  { %v2351_v13 = vpop.eup %2350  ;;  %v392_v19 = vmul.f32 %v2349_v10, %v388_v17 }
 0x3ef   :  { %v2353_v15 = vpop.eup %2352 }
 0x3f0   :  { %v293_v16 = vadd.f32 1.0, %v2353_v15 }
 0x3f2   :  { %2354 = vrcp.f32 %v293_v16 }
 0x3fc   :  { %v2355_v26 = vpop.eup %2354 }
 0x3fd   :  { %v297_v33 = vmul.f32 0.0, %v2355_v26 }
 0x44f   :  { %v399_v7 = vpop.permute.xlu0 %398 }
 0x450   :  { %v403_v9 = vmul.f32 %v2347_v5, %v399_v7 }
 0x451   :  { %v397_v11 = vpop.permute.xlu1 %396 }
 0x452   :  { %408 = vrot.lane.b32.xlu0 %v403_v9, %s2571_s0  ;;  %v402_v12 = vmul.f32 %v2349_v10, %v397_v11 }
 0x454   :  { %406 = vrot.lane.b32.xlu1 %v402_v12, %s2571_s0 }
 0x458   :  { %299 = vrot.lane.b32.xlu1 %v2351_v13, %s2571_s0 }
 0x4c4   :  { %v409_v20 = vpop.permute.xlu0 %408 }
 0x4c5   :  { %v2748_v24 = vadd.f32 %v409_v20, %v393_v22 }
 0x4c6   :  { %v407_v21 = vpop.permute.xlu1 %406 }
 0x4c7   :  { %v2746_v23 = vadd.f32 %v407_v21, %v392_v19 }
 0x4c9   :  { %2356 = vtanh.f32 %v2746_v23 }
 0x4ca   :  { %v300_v27 = vpop.permute.xlu1 %299  ;;  %2358 = vtanh.f32 %v2748_v24 }
 0x4cb   :  { %v302_v29 = vmul.f32 %v2355_v26, %v300_v27 }
 0x4cd   :  { %304 = vrot.lane.b32.xlu1 %v302_v29, %s2571_s0 }
 0x4d3   :  { %v2357_v28 = vpop.eup %2356 }
 0x4d4   :  { %418 = vrot.lane.b32.xlu0 %v2357_v28, %s2571_s0  ;;  %v2359_v25 = vpop.eup %2358 }
 0x4d8   :  { %420 = vrot.lane.b32.xlu0 %v2359_v25, %s2571_s0  ;;  %v627_v25 = vrot.slane %v2746_v23, 7 }
 0x53f   :  { %v305_v34 = vpop.permute.xlu1 %304 }
 0x540   :  { %v2755_v35 = vadd.f32 %v305_v34, %v297_v33  ;;  %v628_v33 = vrot.slane %v2748_v24, 7 }
 0x542   :  { %2360 = vtanh.f32 %v2755_v35 }
 0x546   :  { %v419_v36 = vpop.permute.xlu0 %418 }
 0x547   :  { %v424_v37 = vmul.f32 %v2349_v10, %v419_v36 }
 0x549   :  { %v426_v38 = vpack.c.bf16 %v424_v37, %v424_v37 }
 0x54a   :  { %v421_v39 = vpop.permute.xlu0 %420 }
 0x54b   :  { %v430_v40 = vunpack.c.l.b16 %v426_v38  ;;  %v425_v41 = vmul.f32 %v2347_v5, %v421_v39 }
 0x54c   :  { %v2361_v42 = vpop.eup %2360 }
 0x54d   :  { %v427_v43 = vpack.c.bf16 %v425_v41, %v425_v41  ;;  %310 = vrot.lane.b32.xlu0 %v2361_v42, %s2571_s0  ;;  %v432_v44 = vrot.slane %v430_v40, 1 }
 0x54f   :  { %v431_v46 = vunpack.c.l.b16 %v427_v43 }
 0x551   :  { %v433_v48 = vsel %vm229_vm3, %v431_v46, %v432_v44 }
 0x552   :  { %v434_v49 = vpack.c.b16 %v433_v48, %v433_v48 }
 0x554   :  { %435 = vrot.lane.b32.xlu1 %v434_v49, %s2574_s21 }
 0x5bf   :  { %v311_v50 = vpop.permute.xlu0 %310 }
 0x5c0   :  { %v313_v51 = vmul.f32 %v2355_v26, %v311_v50 }
 0x5c2   :  { %v480_v52 = vpack.c.bf16 %v313_v51, %v313_v51 }
 0x5c4   :  { %482 = vrot.lane.b32.xlu1 %v480_v52, %s2574_s21 }
 0x5c6   :  { %v436_v54 = vpop.permute.xlu1 %435 }
 0x5c7   :  { %2120 = vmatmul.mubr.msk.bf16.vlgmr.msra.gmra.mrb[0].mxu1 %vm246_vm4, %v436_v54  ;;  %2136 = vmatmul.mubr.msk.bf16.vlgmr.msra.gmra.mrb[12].mxu0 %vm246_vm4, %v436_v54 }
 0x5c8   :  { %2124 = vmatpush3.bf16.msra.mxu1 %v2765_v53  ;;  %2127 = vmatprep.mubr.msk.bf16.mxu1 %vm2573_vm2, %v2572_v31 }
 0x5c9   :  { %2125 = vmatprep.subr.bf16.mxu1 %v2572_v31  ;;  %2140 = vmatpush3.bf16.msra.mxu0 %v2683_v30 }
 0x5ca   :  { %2141 = vmatprep.subr.bf16.mxu0 %v2572_v31  ;;  %2143 = vmatprep.mubr.msk.bf16.mxu0 %vm2573_vm2, %v2572_v31 }
 0x5cc   :  { %2126 = vmatpush3.bf16.msra.mxu1 %v2773_v55 }
 0x5cd   :  { %2155 = vmatprep.subr.bf16.mxu1 %v2572_v31  ;;  %2142 = vmatpush3.bf16.msra.mxu0 %v2692_v32 }
 0x5ce   :  { %2147 = vmatprep.subr.bf16.mxu0 %v2572_v31 }
 0x636   :  { %v483_v56 = vpop.permute.xlu1 %482 }
 0x637   :  { %2128 = vmatmul.mubr.msk.bf16.vlgmr.msra.gmra.mrb[0].mxu1 %vm246_vm4, %v483_v56 }
 0x638   :  { %2156 = vmatpush3.bf16.msra.mxu1 %v2710_v45  ;;  %2159 = vmatprep.mubr.msk.bf16.mxu1 %vm2573_vm2, %v2572_v31 }
 0x639   :  { %2157 = vmatprep.subr.bf16.mxu1 %v2572_v31 }
 0x63c   :  { %2158 = vmatpush3.bf16.msra.mxu1 %v2717_v47 }
 0x63d   :  { %2163 = vmatprep.subr.bf16.mxu1 %v2572_v31 }
 0x69a   :  { %v598_v57 = vpop.f32.mrb[12].mxu0 }
 0x69b   :  { %v605_v58 = vrot.slane %v598_v57, 6  ;;  %v606_v59 = vrot.slane %v598_v57, 7  ;;  %v2137_v60 = vpop.f32.mrb[13].mxu0 }
 0x69c   :  { %v601_v61 = vpop.f32.mrb[14].mxu0 }
 0x69d   :  { %v609_v62 = vadd.f32 %v605_v58, %v2663_v8  ;;  %v610_v63 = vadd.f32 %v606_v59, %v2661_v6  ;;  %v2138_v0 = vpop.f32.mrb[15].mxu0 }
 0x69f   :  { %2362 = vtanh.f32 %v609_v62  ;;  %v1988_v4 = vmul.f32 -1.442695, %v609_v62  ;;  %v1989_v5 = vmul.f32 -1.442695, %v610_v63 }
 0x6a0   :  { %2364 = vtanh.f32 %v610_v63 }
 0x6a1   :  { %2366 = vpow2.f32 %v1988_v4 }
 0x6a2   :  { %2368 = vpow2.f32 %v1989_v5 }
 0x6a9   :  { %v2363_v1 = vpop.eup %2362 }
 0x6aa   :  { %v2365_v2 = vpop.eup %2364  ;;  %635 = vrot.lane.b32.xlu0 %v2363_v1, %s2571_s0 }
 0x6ab   :  { %637 = vrot.lane.b32.xlu1 %v2365_v2, %s2571_s0  ;;  %v2367_v9 = vpop.eup %2366 }
 0x6ac   :  { %v2369_v11 = vpop.eup %2368  ;;  %v617_v14 = vadd.f32 1.0, %v2367_v9 }
 0x6ad   :  { %v618_v15 = vadd.f32 1.0, %v2369_v11 }
 0x6ae   :  { %2370 = vrcp.f32 %v617_v14 }
 0x6af   :  { %2372 = vrcp.f32 %v618_v15 }
 0x6b8   :  { %v2371_v17 = vpop.eup %2370 }
 0x6b9   :  { %v2373_v19 = vpop.eup %2372  ;;  %v631_v34 = vmul.f32 %v2371_v17, %v627_v25 }
 0x6ba   :  { %v632_v36 = vmul.f32 %v2373_v19, %v628_v33 }
 0x70a   :  { %v533_v7 = vpop.f32.mrb[0].mxu1 }
 0x70b   :  { %v2129_v10 = vpop.f32.mrb[1].mxu1  ;;  %v2275_v16 = vadd.f32 %v2738_v3, %v533_v7 }
 0x70c   :  { %v536_v12 = vpop.f32.mrb[2].mxu1 }
 0x70d   :  { %v2130_v13 = vpop.f32.mrb[3].mxu1  ;;  %2374 = vtanh.f32 %v2275_v16  ;;  %v1986_v27 = vmul.f32 -1.442695, %v2275_v16 }
 0x70f   :  { %2376 = vpow2.f32 %v1986_v27 }
 0x717   :  { %v2375_v26 = vpop.eup %2374 }
 0x719   :  { %v2377_v29 = vpop.eup %2376 }
 0x71a   :  { %v543_v28 = vadd.f32 1.0, %v2377_v29 }
 0x71c   :  { %v636_v18 = vpop.permute.xlu0 %635  ;;  %2378 = vrcp.f32 %v543_v28 }
 0x71d   :  { %v638_v20 = vpop.permute.xlu1 %637  ;;  %v641_v21 = vmul.f32 %v2371_v17, %v636_v18 }
 0x71e   :  { %v642_v22 = vmul.f32 %v2373_v19, %v638_v20 }
 0x71f   :  { %645 = vrot.lane.b32.xlu0 %v641_v21, %s2571_s0 }
 0x720   :  { %647 = vrot.lane.b32.xlu1 %v642_v22, %s2571_s0 }
 0x723   :  { %549 = vrot.lane.b32.xlu0 %v2375_v26, %s2571_s0 }
 0x726   :  { %v2379_v41 = vpop.eup %2378 }
 0x727   :  { %v547_v24 = vmul.f32 %v2379_v41, %v2755_v35 }
 0x791   :  { %v646_v37 = vpop.permute.xlu0 %645 }
 0x792   :  { %v648_v38 = vpop.permute.xlu1 %647  ;;  %v2803_v39 = vadd.f32 %v646_v37, %v631_v34 }
 0x793   :  { %v2805_v40 = vadd.f32 %v648_v38, %v632_v36 }
 0x794   :  { %2380 = vtanh.f32 %v2803_v39 }
 0x795   :  { %2382 = vtanh.f32 %v2805_v40  ;;  %v550_v42 = vpop.permute.xlu0 %549 }
 0x796   :  { %v552_v43 = vmul.f32 %v2379_v41, %v550_v42 }
 0x798   :  { %554 = vrot.lane.b32.xlu1 %v552_v43, %s2571_s0 }
 0x79e   :  { %v2381_v23 = vpop.eup %2380 }
 0x79f   :  { %v2383_v44 = vpop.eup %2382  ;;  %657 = vrot.lane.b32.xlu0 %v2381_v23, %s2571_s0 }
 0x7a0   :  { %659 = vrot.lane.b32.xlu1 %v2383_v44, %s2571_s0 }
 0x80a   :  { %v555_v46 = vpop.permute.xlu1 %554 }
 0x80b   :  { %v2813_v48 = vadd.f32 %v555_v46, %v547_v24 }
 0x80d   :  { %2384 = vtanh.f32 %v2813_v48 }
 0x811   :  { %v658_v49 = vpop.permute.xlu0 %657 }
 0x812   :  { %v660_v50 = vpop.permute.xlu1 %659  ;;  %v663_v51 = vmul.f32 %v2371_v17, %v658_v49 }
 0x813   :  { %v664_v52 = vmul.f32 %v2373_v19, %v660_v50  ;;  %v855_v50 = vrot.slane %v2803_v39, 7 }
 0x814   :  { %v665_v54 = vpack.c.bf16 %v663_v51, %v663_v51  ;;  %v856_v51 = vrot.slane %v2805_v40, 7 }
 0x815   :  { %v666_v56 = vpack.c.bf16 %v664_v52, %v664_v52 }
 0x816   :  { %v669_v57 = vunpack.c.l.b16 %v665_v54 }
 0x817   :  { %v2385_v58 = vpop.eup %2384  ;;  %v670_v59 = vunpack.c.l.b16 %v666_v56 }
 0x818   :  { %v671_v60 = vrot.slane %v669_v57, 2  ;;  %560 = vrot.lane.b32.xlu0 %v2385_v58, %s2571_s0 }
 0x819   :  { %v672_v61 = vrot.slane %v670_v59, 1 }
 0x81b   :  { %v673_v35 = vsel %vm229_vm3, %v672_v61, %v671_v60 }
 0x81c   :  { %v674_v62 = vpack.c.b16 %v673_v35, %v673_v35 }
 0x81e   :  { %675 = vrot.lane.b32.xlu1 %v674_v62, %s2574_s21 }
 0x88a   :  { %v561_v63 = vpop.permute.xlu0 %560 }
 0x88b   :  { %v563_v0 = vmul.f32 %v2379_v41, %v561_v63 }
 0x88d   :  { %v720_v1 = vpack.c.bf16 %v563_v0, %v563_v0 }
 0x88f   :  { %722 = vrot.lane.b32.xlu0 %v720_v1, %s2574_s21 }
 0x890   :  { %v676_v2 = vpop.permute.xlu1 %675 }
 0x891   :  { %2144 = vmatmul.mubr.msk.bf16.vlgmr.msra.gmra.mrb[16].mxu0 %vm246_vm4, %v676_v2  ;;  %2160 = vmatmul.mubr.msk.bf16.vlgmr.msra.gmra.mrb[4].mxu1 %vm246_vm4, %v676_v2 }
 0x892   :  { %2148 = vmatpush3.bf16.msra.mxu0 %v2765_v53  ;;  %2151 = vmatprep.mubr.msk.bf16.mxu0 %vm2573_vm2, %v2572_v31 }
 0x893   :  { %2149 = vmatprep.subr.bf16.mxu0 %v2572_v31  ;;  %2164 = vmatpush3.bf16.msra.mxu1 %v2683_v30 }
 0x894   :  { %2165 = vmatprep.subr.bf16.mxu1 %v2572_v31  ;;  %2167 = vmatprep.mubr.msk.bf16.mxu1 %vm2573_vm2, %v2572_v31 }
 0x896   :  { %2150 = vmatpush3.bf16.msra.mxu0 %v2773_v55 }
 0x897   :  { %2179 = vmatprep.subr.bf16.mxu0 %v2572_v31  ;;  %2166 = vmatpush3.bf16.msra.mxu1 %v2692_v32 }
 0x898   :  { %2171 = vmatprep.subr.bf16.mxu1 %v2572_v31 }
 0x901   :  { %v723_v4 = vpop.permute.xlu0 %722 }
 0x902   :  { %2152 = vmatmul.mubr.msk.bf16.vlgmr.msra.gmra.mrb[16].mxu0 %vm246_vm4, %v723_v4 }
 0x903   :  { %2180 = vmatpush3.bf16.msra.mxu0 %v2710_v45  ;;  %2183 = vmatprep.mubr.msk.bf16.mxu0 %vm2573_vm2, %v2572_v31 }
 0x904   :  { %2181 = vmatprep.subr.bf16.mxu0 %v2572_v31 }
 0x907   :  { %2182 = vmatpush3.bf16.msra.mxu0 %v2717_v47 }
 0x908   :  { %2187 = vmatprep.subr.bf16.mxu0 %v2572_v31 }
 0x964   :  { %v826_v5 = vpop.f32.mrb[4].mxu1 }
 0x965   :  { %v833_v7 = vrot.slane %v826_v5, 5  ;;  %v834_v9 = vrot.slane %v826_v5, 6  ;;  %v2161_v10 = vpop.f32.mrb[5].mxu1 }
 0x966   :  { %v829_v11 = vpop.f32.mrb[6].mxu1 }
 0x967   :  { %v837_v12 = vadd.f32 %v833_v7, %v2663_v8  ;;  %v838_v13 = vadd.f32 %v834_v9, %v2661_v6  ;;  %v2162_v14 = vpop.f32.mrb[7].mxu1 }
 0x969   :  { %2386 = vtanh.f32 %v837_v12  ;;  %v1994_v17 = vmul.f32 -1.442695, %v837_v12  ;;  %v1995_v18 = vmul.f32 -1.442695, %v838_v13 }
 0x96a   :  { %2388 = vtanh.f32 %v838_v13 }
 0x96b   :  { %2390 = vpow2.f32 %v1994_v17 }
 0x96c   :  { %2392 = vpow2.f32 %v1995_v18 }
 0x973   :  { %v2387_v15 = vpop.eup %2386 }
 0x974   :  { %v2389_v16 = vpop.eup %2388  ;;  %863 = vrot.lane.b32.xlu1 %v2387_v15, %s2571_s0 }
 0x975   :  { %865 = vrot.lane.b32.xlu0 %v2389_v16, %s2571_s0  ;;  %v2391_v19 = vpop.eup %2390 }
 0x976   :  { %v2393_v21 = vpop.eup %2392  ;;  %v845_v29 = vadd.f32 1.0, %v2391_v19 }
 0x977   :  { %v846_v25 = vadd.f32 1.0, %v2393_v21 }
 0x9d5   :  { %v761_v20 = vpop.f32.mrb[16].mxu0 }
 0x9d6   :  { %v2276_v22 = vadd.f32 %v2738_v3, %v761_v20  ;;  %v2153_v26 = vpop.f32.mrb[17].mxu0 }
 0x9d7   :  { %v764_v27 = vpop.f32.mrb[18].mxu0 }
 0x9d8   :  { %2394 = vtanh.f32 %v2276_v22  ;;  %v2154_v28 = vpop.f32.mrb[19].mxu0  ;;  %v1992_v43 = vmul.f32 -1.442695, %v2276_v22 }
 0x9d9   :  { %2396 = vrcp.f32 %v845_v29 }
 0x9da   :  { %2398 = vrcp.f32 %v846_v25 }
 0x9db   :  { %2400 = vpow2.f32 %v1992_v43 }
 0x9e2   :  { %v2395_v33 = vpop.eup %2394 }
 0x9e3   :  { %777 = vrot.lane.b32.xlu1 %v2395_v33, %s2571_s0  ;;  %v2397_v34 = vpop.eup %2396 }
 0x9e4   :  { %v2399_v37 = vpop.eup %2398  ;;  %v859_v52 = vmul.f32 %v2397_v34, %v855_v50 }
 0x9e5   :  { %v2401_v23 = vpop.eup %2400  ;;  %v860_v56 = vmul.f32 %v2399_v37, %v856_v51 }
 0x9e6   :  { %v864_v36 = vpop.permute.xlu1 %863  ;;  %v771_v44 = vadd.f32 1.0, %v2401_v23 }
 0x9e7   :  { %v869_v38 = vmul.f32 %v2397_v34, %v864_v36  ;;  %v866_v41 = vpop.permute.xlu0 %865 }
 0x9e8   :  { %v870_v42 = vmul.f32 %v2399_v37, %v866_v41  ;;  %2402 = vrcp.f32 %v771_v44 }
 0x9e9   :  { %873 = vrot.lane.b32.xlu0 %v869_v38, %s2571_s0 }
 0x9ea   :  { %875 = vrot.lane.b32.xlu1 %v870_v42, %s2571_s0 }
 0x9f2   :  { %v2403_v24 = vpop.eup %2402 }
 0x9f3   :  { %v775_v39 = vmul.f32 %v2403_v24, %v2813_v48 }
 0xa55   :  { %v778_v46 = vpop.permute.xlu1 %777 }
 0xa56   :  { %v780_v49 = vmul.f32 %v2403_v24, %v778_v46 }
 0xa58   :  { %782 = vrot.lane.b32.xlu0 %v780_v49, %s2571_s0 }
 0xa5b   :  { %v874_v54 = vpop.permute.xlu0 %873 }
 0xa5c   :  { %v2852_v57 = vadd.f32 %v874_v54, %v859_v52  ;;  %v876_v58 = vpop.permute.xlu1 %875 }
 0xa5d   :  { %v2854_v59 = vadd.f32 %v876_v58, %v860_v56 }
 0xa5e   :  { %2404 = vtanh.f32 %v2852_v57 }
 0xa5f   :  { %2406 = vtanh.f32 %v2854_v59 }
 0xa68   :  { %v2405_v60 = vpop.eup %2404 }
 0xa69   :  { %v2407_v61 = vpop.eup %2406  ;;  %885 = vrot.lane.b32.xlu1 %v2405_v60, %s2571_s0 }
 0xa6a   :  { %887 = vrot.lane.b32.xlu0 %v2407_v61, %s2571_s0 }
 0xaca   :  { %v783_v40 = vpop.permute.xlu0 %782 }
 0xacb   :  { %v2861_v35 = vadd.f32 %v783_v40, %v775_v39 }
 0xacd   :  { %2408 = vtanh.f32 %v2861_v35 }
 0xad7   :  { %v2409_v62 = vpop.eup %2408 }
 0xad8   :  { %788 = vrot.lane.b32.xlu1 %v2409_v62, %s2571_s0 }
 0xadb   :  { %v886_v63 = vpop.permute.xlu1 %885 }
 0xadc   :  { %v891_v0 = vmul.f32 %v2397_v34, %v886_v63  ;;  %v888_v1 = vpop.permute.xlu0 %887  ;;  %v1083_v63 = vrot.slane %v2852_v57, 7 }
 0xadd   :  { %v892_v2 = vmul.f32 %v2399_v37, %v888_v1 }
 0xade   :  { %v893_v4 = vpack.c.bf16 %v891_v0, %v891_v0  ;;  %v1084_v0 = vrot.slane %v2854_v59, 7 }
 0xadf   :  { %v894_v5 = vpack.c.bf16 %v892_v2, %v892_v2 }
 0xae0   :  { %v897_v7 = vunpack.c.l.b16 %v893_v4 }
 0xae1   :  { %v898_v9 = vunpack.c.l.b16 %v894_v5 }
 0xae2   :  { %v899_v10 = vrot.slane %v897_v7, 3 }
 0xae3   :  { %v900_v11 = vrot.slane %v898_v9, 2 }
 0xae5   :  { %v901_v48 = vsel %vm229_vm3, %v900_v11, %v899_v10 }
 0xae6   :  { %v902_v12 = vpack.c.b16 %v901_v48, %v901_v48 }
 0xae8   :  { %903 = vrot.lane.b32.xlu0 %v902_v12, %s2574_s21 }
 0xb4a   :  { %v789_v13 = vpop.permute.xlu1 %788 }
 0xb4b   :  { %v791_v14 = vmul.f32 %v2403_v24, %v789_v13 }
 0xb4d   :  { %v948_v15 = vpack.c.bf16 %v791_v14, %v791_v14 }
 0xb4f   :  { %950 = vrot.lane.b32.xlu1 %v948_v15, %s2574_s21 }
 0xb5a   :  { %v904_v16 = vpop.permute.xlu0 %903 }
 0xb5b   :  { %2168 = vmatmul.mubr.msk.bf16.vlgmr.msra.gmra.mrb[8].mxu1 %vm246_vm4, %v904_v16  ;;  %2184 = vmatmul.mubr.msk.bf16.vlgmr.msra.gmra.mrb[20].mxu0 %vm246_vm4, %v904_v16 }
 0xb5c   :  { %2172 = vmatpush3.bf16.msra.mxu1 %v2765_v53  ;;  %2175 = vmatprep.mubr.msk.bf16.mxu1 %vm2573_vm2, %v2572_v31 }
 0xb5d   :  { %2173 = vmatprep.subr.bf16.mxu1 %v2572_v31  ;;  %2188 = vmatpush3.bf16.msra.mxu0 %v2683_v30 }
 0xb5e   :  { %2189 = vmatprep.subr.bf16.mxu0 %v2572_v31  ;;  %2191 = vmatprep.mubr.msk.bf16.mxu0 %vm2573_vm2, %v2572_v31 }
 0xb60   :  { %2174 = vmatpush3.bf16.msra.mxu1 %v2773_v55 }
 0xb61   :  { %2203 = vmatprep.subr.bf16.mxu1 %v2572_v31  ;;  %2190 = vmatpush3.bf16.msra.mxu0 %v2692_v32 }
 0xb62   :  { %2195 = vmatprep.subr.bf16.mxu0 %v2572_v31 }
 0xbc1   :  { %v951_v17 = vpop.permute.xlu1 %950 }
 0xbc2   :  { %2176 = vmatmul.mubr.msk.bf16.vlgmr.msra.gmra.mrb[8].mxu1 %vm246_vm4, %v951_v17 }
 0xbc3   :  { %2204 = vmatpush3.bf16.msra.mxu1 %v2710_v45  ;;  %2207 = vmatprep.mubr.msk.bf16.mxu1 %vm2573_vm2, %v2572_v31 }
 0xbc4   :  { %2205 = vmatprep.subr.bf16.mxu1 %v2572_v31 }
 0xbc7   :  { %2206 = vmatpush3.bf16.msra.mxu1 %v2717_v47 }
 0xbc8   :  { %2211 = vmatprep.subr.bf16.mxu1 %v2572_v31 }
 0xc2e   :  { %v1054_v18 = vpop.f32.mrb[20].mxu0 }
 0xc2f   :  { %v1061_v19 = vrot.slane %v1054_v18, 4  ;;  %v1062_v20 = vrot.slane %v1054_v18, 5  ;;  %v2185_v21 = vpop.f32.mrb[21].mxu0 }
 0xc30   :  { %v1057_v22 = vpop.f32.mrb[22].mxu0 }
 0xc31   :  { %v1065_v26 = vadd.f32 %v1061_v19, %v2663_v8  ;;  %v1066_v27 = vadd.f32 %v1062_v20, %v2661_v6  ;;  %v2186_v29 = vpop.f32.mrb[23].mxu0 }
 0xc33   :  { %2410 = vtanh.f32 %v1065_v26  ;;  %v2000_v33 = vmul.f32 -1.442695, %v1065_v26  ;;  %v2001_v34 = vmul.f32 -1.442695, %v1066_v27 }
 0xc34   :  { %2412 = vtanh.f32 %v1066_v27 }
 0xc35   :  { %2414 = vpow2.f32 %v2000_v33 }
 0xc36   :  { %2416 = vpow2.f32 %v2001_v34 }
 0xc3d   :  { %v2411_v28 = vpop.eup %2410 }
 0xc3e   :  { %v2413_v25 = vpop.eup %2412  ;;  %1091 = vrot.lane.b32.xlu0 %v2411_v28, %s2571_s0 }
 0xc3f   :  { %1093 = vrot.lane.b32.xlu1 %v2413_v25, %s2571_s0  ;;  %v2415_v43 = vpop.eup %2414 }
 0xc40   :  { %v2417_v23 = vpop.eup %2416  ;;  %v1073_v24 = vadd.f32 1.0, %v2415_v43 }
 0xc41   :  { %v1074_v46 = vadd.f32 1.0, %v2417_v23 }
 0xc95   :  { %v989_v36 = vpop.f32.mrb[8].mxu1 }
 0xc96   :  { %v2277_v37 = vadd.f32 %v2738_v3, %v989_v36  ;;  %v2177_v38 = vpop.f32.mrb[9].mxu1 }
 0xc97   :  { %v992_v41 = vpop.f32.mrb[10].mxu1 }
 0xc98   :  { %2418 = vtanh.f32 %v2277_v37  ;;  %v2178_v42 = vpop.f32.mrb[11].mxu1  ;;  %v1998_v58 = vmul.f32 -1.442695, %v2277_v37 }
 0xc99   :  { %2420 = vrcp.f32 %v1073_v24 }
 0xc9a   :  { %2422 = vrcp.f32 %v1074_v46 }
 0xc9b   :  { %2424 = vpow2.f32 %v1998_v58 }
 0xca2   :  { %v2419_v44 = vpop.eup %2418 }
 0xca3   :  { %1005 = vrot.lane.b32.xlu0 %v2419_v44, %s2571_s0  ;;  %v2421_v49 = vpop.eup %2420 }
 0xca4   :  { %v2423_v51 = vpop.eup %2422  ;;  %v1087_v1 = vmul.f32 %v2421_v49, %v1083_v63 }
 0xca5   :  { %v2425_v60 = vpop.eup %2424  ;;  %v1088_v2 = vmul.f32 %v2423_v51, %v1084_v0 }
 0xca6   :  { %v999_v61 = vadd.f32 1.0, %v2425_v60 }
 0xca8   :  { %2426 = vrcp.f32 %v999_v61 }
 0xcb0   :  { %v1092_v50 = vpop.permute.xlu0 %1091 }
 0xcb1   :  { %v1094_v52 = vpop.permute.xlu1 %1093  ;;  %v1097_v54 = vmul.f32 %v2421_v49, %v1092_v50 }
 0xcb2   :  { %v1098_v56 = vmul.f32 %v2423_v51, %v1094_v52  ;;  %v2427_v39 = vpop.eup %2426 }
 0xcb3   :  { %1101 = vrot.lane.b32.xlu1 %v1097_v54, %s2571_s0  ;;  %v1003_v57 = vmul.f32 %v2427_v39, %v2861_v35 }
 0xcb4   :  { %1103 = vrot.lane.b32.xlu0 %v1098_v56, %s2571_s0 }
 0xd15   :  { %v1006_v40 = vpop.permute.xlu0 %1005 }
 0xd16   :  { %v1008_v62 = vmul.f32 %v2427_v39, %v1006_v40 }
 0xd18   :  { %1010 = vrot.lane.b32.xlu1 %v1008_v62, %s2571_s0 }
 0xd25   :  { %v1102_v4 = vpop.permute.xlu1 %1101 }
 0xd26   :  { %v1104_v5 = vpop.permute.xlu0 %1103  ;;  %v2900_v7 = vadd.f32 %v1102_v4, %v1087_v1 }
 0xd27   :  { %v2902_v9 = vadd.f32 %v1104_v5, %v1088_v2 }
 0xd28   :  { %2428 = vtanh.f32 %v2900_v7 }
 0xd29   :  { %2430 = vtanh.f32 %v2902_v9 }
 0xd32   :  { %v2429_v10 = vpop.eup %2428 }
 0xd33   :  { %v2431_v11 = vpop.eup %2430  ;;  %1113 = vrot.lane.b32.xlu0 %v2429_v10, %s2571_s0  ;;  %v1311_v10 = vrot.slane %v2900_v7, 7 }
 0xd34   :  { %1115 = vrot.lane.b32.xlu1 %v2431_v11, %s2571_s0  ;;  %v1312_v11 = vrot.slane %v2902_v9, 7 }
 0xd8a   :  { %v1011_v59 = vpop.permute.xlu1 %1010 }
 0xd8b   :  { %v2909_v48 = vadd.f32 %v1011_v59, %v1003_v57 }
 0xd8d   :  { %2432 = vtanh.f32 %v2909_v48 }
 0xd97   :  { %v2433_v12 = vpop.eup %2432 }
 0xd98   :  { %1016 = vrot.lane.b32.xlu0 %v2433_v12, %s2571_s0 }
 0xda5   :  { %v1114_v13 = vpop.permute.xlu0 %1113 }
 0xda6   :  { %v1116_v14 = vpop.permute.xlu1 %1115  ;;  %v1119_v15 = vmul.f32 %v2421_v49, %v1114_v13 }
 0xda7   :  { %v1120_v16 = vmul.f32 %v2423_v51, %v1116_v14 }
 0xda8   :  { %v1121_v17 = vpack.c.bf16 %v1119_v15, %v1119_v15 }
 0xda9   :  { %v1122_v18 = vpack.c.bf16 %v1120_v16, %v1120_v16 }
 0xdaa   :  { %v1125_v19 = vunpack.c.l.b16 %v1121_v17 }
 0xdab   :  { %v1126_v20 = vunpack.c.l.b16 %v1122_v18 }
 0xdac   :  { %v1127_v21 = vrot.slane %v1125_v19, 4 }
 0xdad   :  { %v1128_v22 = vrot.slane %v1126_v20, 3 }
 0xdaf   :  { %v1129_v35 = vsel %vm229_vm3, %v1128_v22, %v1127_v21 }
 0xdb0   :  { %v1130_v26 = vpack.c.b16 %v1129_v35, %v1129_v35 }
 0xdb2   :  { %1131 = vrot.lane.b32.xlu1 %v1130_v26, %s2574_s21 }
 0xe0a   :  { %v1017_v27 = vpop.permute.xlu0 %1016 }
 0xe0b   :  { %v1019_v29 = vmul.f32 %v2427_v39, %v1017_v27 }
 0xe0d   :  { %v1176_v28 = vpack.c.bf16 %v1019_v29, %v1019_v29 }
 0xe0f   :  { %1178 = vrot.lane.b32.xlu0 %v1176_v28, %s2574_s21 }
 0xe24   :  { %v1132_v25 = vpop.permute.xlu1 %1131 }
 0xe25   :  { %2192 = vmatmul.mubr.msk.bf16.vlgmr.msra.gmra.mrb[24].mxu0 %vm246_vm4, %v1132_v25  ;;  %2208 = vmatmul.mubr.msk.bf16.vlgmr.msra.gmra.mrb[12].mxu1 %vm246_vm4, %v1132_v25 }
 0xe26   :  { %2196 = vmatpush3.bf16.msra.mxu0 %v2765_v53  ;;  %2199 = vmatprep.mubr.msk.bf16.mxu0 %vm2573_vm2, %v2572_v31 }
 0xe27   :  { %2197 = vmatprep.subr.bf16.mxu0 %v2572_v31  ;;  %2212 = vmatpush3.bf16.msra.mxu1 %v2683_v30 }
 0xe28   :  { %2213 = vmatprep.subr.bf16.mxu1 %v2572_v31  ;;  %2215 = vmatprep.mubr.msk.bf16.mxu1 %vm2573_vm2, %v2572_v31 }
 0xe2a   :  { %2198 = vmatpush3.bf16.msra.mxu0 %v2773_v55 }
 0xe2b   :  { %2227 = vmatprep.subr.bf16.mxu0 %v2572_v31  ;;  %2214 = vmatpush3.bf16.msra.mxu1 %v2692_v32 }
 0xe2c   :  { %2219 = vmatprep.subr.bf16.mxu1 %v2572_v31 }
 0xe81   :  { %v1179_v33 = vpop.permute.xlu0 %1178 }
 0xe82   :  { %2200 = vmatmul.mubr.msk.bf16.vlgmr.msra.gmra.mrb[24].mxu0 %vm246_vm4, %v1179_v33 }
 0xe83   :  { %2228 = vmatpush3.bf16.msra.mxu0 %v2710_v45  ;;  %2231 = vmatprep.mubr.msk.bf16.mxu0 %vm2573_vm2, %v2572_v31 }
 0xe84   :  { %2229 = vmatprep.subr.bf16.mxu0 %v2572_v31 }
 0xe87   :  { %2230 = vmatpush3.bf16.msra.mxu0 %v2717_v47 }
 0xe88   :  { %2235 = vmatprep.subr.bf16.mxu0 %v2572_v31 }
 0xef8   :  { %v1282_v30 = vpop.f32.mrb[12].mxu1 }
 0xef9   :  { %v1289_v34 = vrot.slane %v1282_v30, 3  ;;  %v1290_v36 = vrot.slane %v1282_v30, 4  ;;  %v2209_v32 = vpop.f32.mrb[13].mxu1 }
 0xefa   :  { %v1285_v37 = vpop.f32.mrb[14].mxu1 }
 0xefb   :  { %v1293_v38 = vadd.f32 %v1289_v34, %v2663_v8  ;;  %v1294_v41 = vadd.f32 %v1290_v36, %v2661_v6  ;;  %v2210_v42 = vpop.f32.mrb[15].mxu1 }
 0xefc   :  { %v2516_v42 = vld [vmem:[%s3091_s2] sm:$0xff]  }
 0xefd   :  { %2434 = vtanh.f32 %v1293_v38  ;;  %v2006_v49 = vmul.f32 -1.442695, %v1293_v38  ;;  %v2007_v50 = vmul.f32 -1.442695, %v1294_v41  ;;  %v2973_v38 = vld [vmem:[%s3093_s4] sm:$0xff]  }
 0xefe   :  { %2436 = vtanh.f32 %v1294_v41 }
 0xf07   :  { %v2435_v45 = vpop.eup %2434 }
 0xf08   :  { %v2437_v43 = vpop.eup %2436  ;;  %1319 = vrot.lane.b32.xlu1 %v2435_v45, %s2571_s0 }
 0xf09   :  { %1321 = vrot.lane.b32.xlu0 %v2437_v43, %s2571_s0 }
 0xf55   :  { %v1217_v47 = vpop.f32.mrb[24].mxu0 }
 0xf56   :  { %v2278_v23 = vadd.f32 %v2738_v3, %v1217_v47  ;;  %v2201_v44 = vpop.f32.mrb[25].mxu0 }
 0xf57   :  { %v1220_v24 = vpop.f32.mrb[26].mxu0 }
 0xf58   :  { %2438 = vtanh.f32 %v2278_v23  ;;  %v2202_v46 = vpop.f32.mrb[27].mxu0  ;;  %v2004_v63 = vmul.f32 -1.442695, %v2278_v23 }
 0xf59   :  { %2440 = vpow2.f32 %v2006_v49 }
 0xf5a   :  { %2442 = vpow2.f32 %v2007_v50 }
 0xf62   :  { %v2439_v51 = vpop.eup %2438 }
 0xf63   :  { %1233 = vrot.lane.b32.xlu1 %v2439_v51, %s2571_s0  ;;  %v2441_v52 = vpop.eup %2440 }
 0xf64   :  { %v2443_v54 = vpop.eup %2442  ;;  %v1301_v56 = vadd.f32 1.0, %v2441_v52 }
 0xf65   :  { %v1302_v58 = vadd.f32 1.0, %v2443_v54  ;;  %v3006_v54 = vld [vmem:[%s3095_s6] ss:$0 sm:$0xff] }
 0xf66   :  { %2444 = vrcp.f32 %v1301_v56 }
 0xf67   :  { %2446 = vrcp.f32 %v1302_v58 }
 0xf68   :  { %2448 = vpow2.f32 %v2004_v63 }
 0xf70   :  { %v2445_v60 = vpop.eup %2444 }
 0xf71   :  { %v2447_v3 = vpop.eup %2446  ;;  %v1315_v57 = vmul.f32 %v2445_v60, %v1311_v10 }
 0xf72   :  { %v2449_v0 = vpop.eup %2448  ;;  %v1316_v12 = vmul.f32 %v2447_v3, %v1312_v11 }
 0xf73   :  { %v1227_v1 = vadd.f32 1.0, %v2449_v0 }
 0xf75   :  { %2450 = vrcp.f32 %v1227_v1 }
 0xf7a   :  { %v1320_v61 = vpop.permute.xlu1 %1319 }
 0xf7b   :  { %v1325_v39 = vmul.f32 %v2445_v60, %v1320_v61  ;;  %v1322_v40 = vpop.permute.xlu0 %1321 }
 0xf7c   :  { %v1326_v62 = vmul.f32 %v2447_v3, %v1322_v40 }
 0xf7d   :  { %1329 = vrot.lane.b32.xlu0 %v1325_v39, %s2571_s0 }
 0xf7e   :  { %1331 = vrot.lane.b32.xlu1 %v1326_v62, %s2571_s0 }
 0xf7f   :  { %v2451_v2 = vpop.eup %2450 }
 0xf80   :  { %v1231_v7 = vmul.f32 %v2451_v2, %v2909_v48 }
 0xfd5   :  { %v1234_v4 = vpop.permute.xlu1 %1233 }
 0xfd6   :  { %v1236_v5 = vmul.f32 %v2451_v2, %v1234_v4 }
 0xfd8   :  { %1238 = vrot.lane.b32.xlu0 %v1236_v5, %s2571_s0 }
 0xfef   :  { %v1330_v59 = vpop.permute.xlu0 %1329 }
 0xff0   :  { %v2948_v13 = vadd.f32 %v1330_v59, %v1315_v57  ;;  %v1332_v14 = vpop.permute.xlu1 %1331 }
 0xff1   :  { %v2950_v15 = vadd.f32 %v1332_v14, %v1316_v12 }
 0xff2   :  { %2452 = vtanh.f32 %v2948_v13 }
 0xff3   :  { %2454 = vtanh.f32 %v2950_v15 }
 0xffc   :  { %v2453_v16 = vpop.eup %2452 }
 0xffd   :  { %v2455_v17 = vpop.eup %2454  ;;  %1341 = vrot.lane.b32.xlu1 %v2453_v16, %s2571_s0 }
 0xffe   :  { %1343 = vrot.lane.b32.xlu0 %v2455_v17, %s2571_s0 }
0x104a   :  { %v1239_v9 = vpop.permute.xlu0 %1238 }
0x104b   :  { %v2957_v18 = vadd.f32 %v1239_v9, %v1231_v7  ;;  %v1539_v9 = vrot.slane %v2948_v13, 7 }
0x104d   :  { %2456 = vtanh.f32 %v2957_v18 }
0x1057   :  { %v2457_v19 = vpop.eup %2456 }
0x1058   :  { %1244 = vrot.lane.b32.xlu1 %v2457_v19, %s2571_s0  ;;  %v1540_v19 = vrot.slane %v2950_v15, 7 }
0x106f   :  { %v1342_v20 = vpop.permute.xlu1 %1341 }
0x1070   :  { %v1347_v21 = vmul.f32 %v2445_v60, %v1342_v20  ;;  %v1344_v22 = vpop.permute.xlu0 %1343 }
0x1071   :  { %v1348_v35 = vmul.f32 %v2447_v3, %v1344_v22 }
0x1072   :  { %v1349_v26 = vpack.c.bf16 %v1347_v21, %v1347_v21 }
0x1073   :  { %v1350_v27 = vpack.c.bf16 %v1348_v35, %v1348_v35 }
0x1074   :  { %v1353_v29 = vunpack.c.l.b16 %v1349_v26 }
0x1075   :  { %v1354_v28 = vunpack.c.l.b16 %v1350_v27 }
0x1076   :  { %v1355_v25 = vrot.slane %v1353_v29, 5 }
0x1077   :  { %v1356_v33 = vrot.slane %v1354_v28, 4 }
0x1079   :  { %v1357_v48 = vsel %vm229_vm3, %v1356_v33, %v1355_v25 }
0x107a   :  { %v1358_v30 = vpack.c.b16 %v1357_v48, %v1357_v48 }
0x107c   :  { %1359 = vrot.lane.b32.xlu0 %v1358_v30, %s2574_s21 }
0x10ca   :  { %v1245_v34 = vpop.permute.xlu1 %1244 }
0x10cb   :  { %v1247_v36 = vmul.f32 %v2451_v2, %v1245_v34 }
0x10cd   :  { %v1404_v32 = vpack.c.bf16 %v1247_v36, %v1247_v36 }
0x10cf   :  { %1406 = vrot.lane.b32.xlu1 %v1404_v32, %s2574_s21 }
0x10ee   :  { %v1360_v37 = vpop.permute.xlu0 %1359 }
0x10ef   :  { %2216 = vmatmul.mubr.msk.bf16.vlgmr.msra.gmra.mrb[16].mxu1 %vm246_vm4, %v1360_v37  ;;  %2232 = vmatmul.mubr.msk.bf16.vlgmr.msra.gmra.mrb[28].mxu0 %vm246_vm4, %v1360_v37 }
0x10f0   :  { %2220 = vmatpush3.bf16.msra.mxu1 %v2765_v53  ;;  %2223 = vmatprep.mubr.msk.bf16.mxu1 %vm2573_vm2, %v2572_v31  ;;  %v2984_v53 = vld [vmem:[%s3093_s4 + $0x8] sm:$0xff]  }
0x10f1   :  { %2221 = vmatprep.subr.bf16.mxu1 %v2572_v31  ;;  %2236 = vmatpush3.bf16.msra.mxu0 %v2973_v38 }
0x10f2   :  { %2237 = vmatprep.subr.bf16.mxu0 %v2572_v31  ;;  %2239 = vmatprep.mubr.msk.bf16.mxu0 %vm2573_vm2, %v2572_v31 }
0x10f4   :  { %2222 = vmatpush3.bf16.msra.mxu1 %v2773_v55  ;;  %v2517_v55 = vld [vmem:[%s3091_s2 + $0x8] sm:$0xff]  }
0x10f5   :  { %2251 = vmatprep.subr.bf16.mxu1 %v2572_v31  ;;  %2238 = vmatpush3.bf16.msra.mxu0 %v2984_v53 }
0x10f6   :  { %2243 = vmatprep.subr.bf16.mxu0 %v2572_v31 }
0x1141   :  { %v1407_v41 = vpop.permute.xlu1 %1406 }
0x1142   :  { %2224 = vmatmul.mubr.msk.bf16.vlgmr.msra.gmra.mrb[16].mxu1 %vm246_vm4, %v1407_v41 }
0x1143   :  { %2252 = vmatpush3.bf16.msra.mxu1 %v2516_v42  ;;  %2255 = vmatprep.mubr.msk.bf16.mxu1 %vm2573_vm2, %v2572_v31 }
0x1144   :  { %2253 = vmatprep.subr.bf16.mxu1 %v2572_v31 }
0x1147   :  { %2254 = vmatpush3.bf16.msra.mxu1 %v2517_v55 }
0x1148   :  { %2259 = vmatprep.subr.bf16.mxu1 %v2572_v31 }
0x11c2   :  { %v1510_v45 = vpop.f32.mrb[28].mxu0 }
0x11c3   :  { %v1517_v43 = vrot.slane %v1510_v45, 2  ;;  %v1518_v47 = vrot.slane %v1510_v45, 3  ;;  %v2233_v23 = vpop.f32.mrb[29].mxu0 }
0x11c4   :  { %v1513_v44 = vpop.f32.mrb[30].mxu0 }
0x11c5   :  { %v1521_v24 = vadd.f32 %v1517_v43, %v2663_v8  ;;  %v1522_v46 = vadd.f32 %v1518_v47, %v2661_v6  ;;  %v2234_v49 = vpop.f32.mrb[31].mxu0 }
0x11c6   :  { %v3049_v49 = vld [vmem:[%s3094_s5 + $0x8] sm:$0xff]  }
0x11c7   :  { %2458 = vtanh.f32 %v1521_v24  ;;  %v2012_v39 = vmul.f32 -1.442695, %v1521_v24  ;;  %v2013_v40 = vmul.f32 -1.442695, %v1522_v46 }
0x11c8   :  { %2460 = vtanh.f32 %v1522_v46  ;;  %v3036_v46 = vld [vmem:[%s3094_s5] sm:$0xff]  }
0x11d1   :  { %v2459_v50 = vpop.eup %2458 }
0x11d2   :  { %v2461_v51 = vpop.eup %2460  ;;  %1547 = vrot.lane.b32.xlu0 %v2459_v50, %s2571_s0 }
0x11d3   :  { %1549 = vrot.lane.b32.xlu1 %v2461_v51, %s2571_s0 }
0x1215   :  { %v1445_v52 = vpop.f32.mrb[16].mxu1 }
0x1216   :  { %v2279_v56 = vadd.f32 %v3006_v54, %v1445_v52  ;;  %v2225_v58 = vpop.f32.mrb[17].mxu1 }
0x1217   :  { %v1448_v60 = vpop.f32.mrb[18].mxu1 }
0x1218   :  { %2462 = vtanh.f32 %v2279_v56  ;;  %v2226_v61 = vpop.f32.mrb[19].mxu1  ;;  %v2010_v59 = vmul.f32 -1.442695, %v2279_v56 }
0x1219   :  { %2464 = vpow2.f32 %v2012_v39 }
0x121a   :  { %2466 = vpow2.f32 %v2013_v40 }
0x1222   :  { %v2463_v3 = vpop.eup %2462 }
0x1223   :  { %1461 = vrot.lane.b32.xlu0 %v2463_v3, %s2571_s0  ;;  %v2465_v62 = vpop.eup %2464 }
0x1224   :  { %v2467_v63 = vpop.eup %2466  ;;  %v1529_v0 = vadd.f32 1.0, %v2465_v62 }
0x1225   :  { %v1530_v1 = vadd.f32 1.0, %v2467_v63 }
0x1226   :  { %2468 = vrcp.f32 %v1529_v0 }
0x1227   :  { %2470 = vrcp.f32 %v1530_v1 }
0x1228   :  { %2472 = vpow2.f32 %v2010_v59 }
0x1230   :  { %v2469_v2 = vpop.eup %2468 }
0x1231   :  { %v2471_v5 = vpop.eup %2470  ;;  %v1543_v20 = vmul.f32 %v2469_v2, %v1539_v9 }
0x1232   :  { %v2473_v12 = vpop.eup %2472  ;;  %v1544_v21 = vmul.f32 %v2471_v5, %v1540_v19 }
0x1233   :  { %v1455_v14 = vadd.f32 1.0, %v2473_v12 }
0x1235   :  { %2474 = vrcp.f32 %v1455_v14 }
0x123f   :  { %v2475_v16 = vpop.eup %2474 }
0x1240   :  { %v1459_v13 = vmul.f32 %v2475_v16, %v2957_v18 }
0x1244   :  { %v1548_v4 = vpop.permute.xlu0 %1547 }
0x1245   :  { %v1550_v10 = vpop.permute.xlu1 %1549  ;;  %v1553_v11 = vmul.f32 %v2469_v2, %v1548_v4 }
0x1246   :  { %v1554_v57 = vmul.f32 %v2471_v5, %v1550_v10 }
0x1247   :  { %1557 = vrot.lane.b32.xlu1 %v1553_v11, %s2571_s0 }
0x1248   :  { %1559 = vrot.lane.b32.xlu0 %v1554_v57, %s2571_s0 }
0x1295   :  { %v1462_v17 = vpop.permute.xlu0 %1461 }
0x1296   :  { %v1464_v7 = vmul.f32 %v2475_v16, %v1462_v17 }
0x1298   :  { %1466 = vrot.lane.b32.xlu1 %v1464_v7, %s2571_s0 }
0x12b9   :  { %v1558_v22 = vpop.permute.xlu1 %1557 }
0x12ba   :  { %v1560_v35 = vpop.permute.xlu0 %1559  ;;  %v3015_v26 = vadd.f32 %v1558_v22, %v1543_v20 }
0x12bb   :  { %v3017_v27 = vadd.f32 %v1560_v35, %v1544_v21 }
0x12bc   :  { %2476 = vtanh.f32 %v3015_v26  ;;  %v1767_v35 = vrot.slane %v3015_v26, 7 }
0x12bd   :  { %2478 = vtanh.f32 %v3017_v27 }
0x12c6   :  { %v2477_v29 = vpop.eup %2476 }
0x12c7   :  { %v2479_v28 = vpop.eup %2478  ;;  %1569 = vrot.lane.b32.xlu0 %v2477_v29, %s2571_s0  ;;  %v1768_v29 = vrot.slane %v3017_v27, 7 }
0x12c8   :  { %1571 = vrot.lane.b32.xlu1 %v2479_v28, %s2571_s0 }
0x130a   :  { %v1467_v15 = vpop.permute.xlu1 %1466 }
0x130b   :  { %v3024_v25 = vadd.f32 %v1467_v15, %v1459_v13 }
0x130d   :  { %2480 = vtanh.f32 %v3024_v25 }
0x1317   :  { %v2481_v33 = vpop.eup %2480 }
0x1318   :  { %1472 = vrot.lane.b32.xlu0 %v2481_v33, %s2571_s0 }
0x1339   :  { %v1570_v48 = vpop.permute.xlu0 %1569 }
0x133a   :  { %v1572_v30 = vpop.permute.xlu1 %1571  ;;  %v1575_v34 = vmul.f32 %v2469_v2, %v1570_v48 }
0x133b   :  { %v1576_v36 = vmul.f32 %v2471_v5, %v1572_v30 }
0x133c   :  { %v1577_v32 = vpack.c.bf16 %v1575_v34, %v1575_v34 }
0x133d   :  { %v1578_v37 = vpack.c.bf16 %v1576_v36, %v1576_v36 }
0x133e   :  { %v1581_v41 = vunpack.c.l.b16 %v1577_v32 }
0x133f   :  { %v1582_v42 = vunpack.c.l.b16 %v1578_v37 }
0x1340   :  { %v1583_v55 = vrot.slane %v1581_v41, 6 }
0x1341   :  { %v1584_v45 = vrot.slane %v1582_v42, 5 }
0x1343   :  { %v1585_v18 = vsel %vm229_vm3, %v1584_v45, %v1583_v55 }
0x1344   :  { %v1586_v43 = vpack.c.b16 %v1585_v18, %v1585_v18 }
0x1346   :  { %1587 = vrot.lane.b32.xlu1 %v1586_v43, %s2574_s21 }
0x138a   :  { %v1473_v47 = vpop.permute.xlu0 %1472 }
0x138b   :  { %v1475_v23 = vmul.f32 %v2475_v16, %v1473_v47 }
0x138d   :  { %v1632_v44 = vpack.c.bf16 %v1475_v23, %v1475_v23 }
0x138f   :  { %1634 = vrot.lane.b32.xlu0 %v1632_v44, %s2574_s21 }
0x13b8   :  { %v1588_v24 = vpop.permute.xlu1 %1587 }
0x13b9   :  { %2240 = vmatmul.mubr.msk.bf16.vlgmr.msra.gmra.mrb[32].mxu0 %vm246_vm4, %v1588_v24  ;;  %2256 = vmatmul.mubr.msk.bf16.vlgmr.msra.gmra.mrb[20].mxu1 %vm246_vm4, %v1588_v24 }
0x13ba   :  { %2244 = vmatpush3.bf16.msra.mxu0 %v3036_v46  ;;  %2247 = vmatprep.mubr.msk.bf16.mxu0 %vm2573_vm2, %v2572_v31 }
0x13bb   :  { %2245 = vmatprep.subr.bf16.mxu0 %v2572_v31  ;;  %2260 = vmatpush3.bf16.msra.mxu1 %v2973_v38 }
0x13bc   :  { %2261 = vmatprep.subr.bf16.mxu1 %v2572_v31  ;;  %2263 = vmatprep.mubr.msk.bf16.mxu1 %vm2573_vm2, %v2572_v31 }
0x13be   :  { %2246 = vmatpush3.bf16.msra.mxu0 %v3049_v49 }
0x13bf   :  { %2262 = vmatpush3.bf16.msra.mxu1 %v2984_v53 }
0x13c0   :  { %2267 = vmatprep.subr.bf16.mxu1 %v2572_v31 }
0x1401   :  { %v1635_v50 = vpop.permute.xlu0 %1634 }
0x1402   :  { %2248 = vmatmul.mubr.msk.bf16.vlgmr.msra.gmra.mrb[32].mxu0 %vm246_vm4, %v1635_v50 }
0x148c   :  { %v1738_v38 = vpop.f32.mrb[20].mxu1 }
0x148d   :  { %v1745_v51 = vrot.slane %v1738_v38, 1  ;;  %v1746_v52 = vrot.slane %v1738_v38, 2  ;;  %v2257_v56 = vpop.f32.mrb[21].mxu1 }
0x148e   :  { %v1741_v58 = vpop.f32.mrb[22].mxu1 }
0x148f   :  { %v1749_v60 = vadd.f32 %v1745_v51, %v2663_v8  ;;  %v1750_v61 = vadd.f32 %v1746_v52, %v2661_v6  ;;  %v2258_v3 = vpop.f32.mrb[23].mxu1 }
0x1491   :  { %2482 = vtanh.f32 %v1749_v60  ;;  %v2018_v6 = vmul.f32 -1.442695, %v1749_v60  ;;  %v2019_v8 = vmul.f32 -1.442695, %v1750_v61 }
0x1492   :  { %2484 = vtanh.f32 %v1750_v61 }
0x149b   :  { %v2483_v39 = vpop.eup %2482 }
0x149c   :  { %v2485_v40 = vpop.eup %2484  ;;  %1775 = vrot.lane.b32.xlu1 %v2483_v39, %s2571_s0 }
0x149d   :  { %1777 = vrot.lane.b32.xlu0 %v2485_v40, %s2571_s0 }
0x14d5   :  { %v1673_v53 = vpop.f32.mrb[32].mxu0 }
0x14d6   :  { %v2280_v62 = vadd.f32 %v3006_v54, %v1673_v53  ;;  %v2249_v63 = vpop.f32.mrb[33].mxu0 }
0x14d7   :  { %v1676_v0 = vpop.f32.mrb[34].mxu0 }
0x14d8   :  { %2486 = vtanh.f32 %v2280_v62  ;;  %v2250_v1 = vpop.f32.mrb[35].mxu0  ;;  %v2016_v7 = vmul.f32 -1.442695, %v2280_v62 }
0x14d9   :  { %2488 = vpow2.f32 %v2018_v6  ;;  %v2023_v1 = vld [vmem:[#allocation5] ss:$0 sm:$0xff] }
0x14da   :  { %2490 = vpow2.f32 %v2019_v8 }
0x14e2   :  { %v2487_v2 = vpop.eup %2486 }
0x14e3   :  { %1689 = vrot.lane.b32.xlu1 %v2487_v2, %s2571_s0  ;;  %v2489_v4 = vpop.eup %2488 }
0x14e4   :  { %v2491_v5 = vpop.eup %2490  ;;  %v1757_v10 = vadd.f32 1.0, %v2489_v4 }
0x14e5   :  { %v1758_v11 = vadd.f32 1.0, %v2491_v5 }
0x14e6   :  { %2492 = vrcp.f32 %v1757_v10 }
0x14e7   :  { %2494 = vrcp.f32 %v1758_v11 }
0x14e8   :  { %2496 = vpow2.f32 %v2016_v7 }
0x14f0   :  { %v2493_v57 = vpop.eup %2492 }
0x14f1   :  { %v2495_v12 = vpop.eup %2494  ;;  %v1771_v28 = vmul.f32 %v2493_v57, %v1767_v35 }
0x14f2   :  { %v2497_v9 = vpop.eup %2496  ;;  %v1772_v15 = vmul.f32 %v2495_v12, %v1768_v29 }
0x14f3   :  { %v1683_v19 = vadd.f32 1.0, %v2497_v9 }
0x14f5   :  { %2498 = vrcp.f32 %v1683_v19 }
0x14ff   :  { %v2499_v20 = vpop.eup %2498 }
0x1500   :  { %v1687_v32 = vmul.f32 %v2499_v20, %v3024_v25 }
0x150e   :  { %v1776_v59 = vpop.permute.xlu1 %1775 }
0x150f   :  { %v1781_v14 = vmul.f32 %v2493_v57, %v1776_v59  ;;  %v1778_v16 = vpop.permute.xlu0 %1777 }
0x1510   :  { %v1782_v17 = vmul.f32 %v2495_v12, %v1778_v16 }
0x1511   :  { %1785 = vrot.lane.b32.xlu0 %v1781_v14, %s2571_s0 }
0x1512   :  { %1787 = vrot.lane.b32.xlu1 %v1782_v17, %s2571_s0 }
0x1555   :  { %v1690_v21 = vpop.permute.xlu1 %1689 }
0x1556   :  { %v1692_v22 = vmul.f32 %v2499_v20, %v1690_v21 }
0x1558   :  { %1694 = vrot.lane.b32.xlu0 %v1692_v22, %s2571_s0 }
0x1583   :  { %v1786_v13 = vpop.permute.xlu0 %1785 }
0x1584   :  { %v1791_v33 = vadd.f32 %v1786_v13, %v1771_v28  ;;  %v1788_v48 = vpop.permute.xlu1 %1787 }
0x1585   :  { %v1792_v30 = vadd.f32 %v1788_v48, %v1772_v15 }
0x1586   :  { %2500 = vtanh.f32 %v1791_v33 }
0x1587   :  { %2502 = vtanh.f32 %v1792_v30 }
0x1590   :  { %v2501_v34 = vpop.eup %2500 }
0x1591   :  { %v2503_v36 = vpop.eup %2502  ;;  %1797 = vrot.lane.b32.xlu1 %v2501_v34, %s2571_s0 }
0x1592   :  { %1799 = vrot.lane.b32.xlu0 %v2503_v36, %s2571_s0 }
0x15ca   :  { %v1695_v37 = vpop.permute.xlu0 %1694 }
0x15cb   :  { %v1697_v26 = vadd.f32 %v1695_v37, %v1687_v32 }
0x15cd   :  { %2504 = vtanh.f32 %v1697_v26 }
0x15d7   :  { %v2505_v27 = vpop.eup %2504 }
0x15d8   :  { %1700 = vrot.lane.b32.xlu1 %v2505_v27, %s2571_s0 }
0x1603   :  { %v1798_v41 = vpop.permute.xlu1 %1797 }
0x1604   :  { %v1803_v42 = vmul.f32 %v2493_v57, %v1798_v41  ;;  %v1800_v55 = vpop.permute.xlu0 %1799 }
0x1605   :  { %v1804_v45 = vmul.f32 %v2495_v12, %v1800_v55  ;;  %v2024_v12 = vld [vmem:[#allocation2] ss:$0 sm:$0xff] }
0x1606   :  { %v1805_v18 = vpack.c.bf16 %v1803_v42, %v1803_v42 }
0x1607   :  { %v1806_v43 = vpack.c.bf16 %v1804_v45, %v1804_v45 }
0x1608   :  { %v1809_v47 = vunpack.c.l.b16 %v1805_v18 }
0x1609   :  { %v1810_v23 = vunpack.c.l.b16 %v1806_v43 }
0x160a   :  { %v1811_v44 = vrot.slane %v1809_v47, 7 }
0x160b   :  { %v1812_v24 = vrot.slane %v1810_v23, 6 }
0x160d   :  { %v1813_v50 = vsel %vm229_vm3, %v1812_v24, %v1811_v44 }
0x160e   :  { %v1814_v38 = vpack.c.b16 %v1813_v50, %v1813_v50 }
0x1610   :  { %1815 = vrot.lane.b32.xlu0 %v1814_v38, %s2574_s21 }
0x164a   :  { %v1701_v25 = vpop.permute.xlu1 %1700 }
0x164b   :  { %v1703_v51 = vmul.f32 %v2499_v20, %v1701_v25 }
0x164d   :  { %v1860_v52 = vpack.c.bf16 %v1703_v51, %v1703_v51 }
0x164f   :  { %1862 = vrot.lane.b32.xlu1 %v1860_v52, %s2574_s21 }
0x1682   :  { %v1816_v56 = vpop.permute.xlu0 %1815 }
0x1683   :  { %2264 = vmatmul.mubr.msk.bf16.vlgmr.msra.gmra.mrb[24].mxu1 %vm246_vm4, %v1816_v56 }
0x1684   :  { %2268 = vmatpush3.bf16.msra.mxu1 %v3036_v46  ;;  %2271 = vmatprep.mubr.msk.bf16.mxu1 %vm2573_vm2, %v2572_v31 }
0x1685   :  { %2269 = vmatprep.subr.bf16.mxu1 %v2572_v31 }
0x1688   :  { %2270 = vmatpush3.bf16.msra.mxu1 %v3049_v49 }
0x16c1   :  { %v1863_v58 = vpop.permute.xlu1 %1862 }
0x16c2   :  { %2272 = vmatmul.mubr.msk.bf16.vlgmr.msra.gmra.mrb[24].mxu1 %vm246_vm4, %v1863_v58 }
0x1795   :  { %v1901_v60 = vpop.f32.mrb[24].mxu1 }
0x1796   :  { %v2281_v61 = vadd.f32 %v3006_v54, %v1901_v60  ;;  %v2273_v3 = vpop.f32.mrb[25].mxu1 }
0x1797   :  { %v1904_v39 = vpop.f32.mrb[26].mxu1 }
0x1798   :  { %2506 = vtanh.f32 %v2281_v61  ;;  %v2274_v40 = vpop.f32.mrb[27].mxu1  ;;  %v2022_v46 = vmul.f32 -1.442695, %v2281_v61 }
0x179a   :  { %2508 = vpow2.f32 %v2022_v46 }
0x17a2   :  { %v2507_v53 = vpop.eup %2506 }
0x17a3   :  { %1917 = vrot.lane.b32.xlu0 %v2507_v53, %s2571_s0 }
0x17a4   :  { %v2509_v62 = vpop.eup %2508 }
0x17a5   :  { %v1911_v63 = vadd.f32 1.0, %v2509_v62 }
0x17a7   :  { %2510 = vrcp.f32 %v1911_v63 }
0x17b1   :  { %v2511_v31 = vpop.eup %2510 }
0x17b2   :  { %v1915_v54 = vmul.f32 %v2511_v31, %v1697_v26 }
0x1815   :  { %v1918_v49 = vpop.permute.xlu0 %1917 }
0x1816   :  { %v1920_v0 = vmul.f32 %v2511_v31, %v1918_v49 }
0x1818   :  { %1922 = vrot.lane.b32.xlu1 %v1920_v0, %s2571_s0 }
0x181c   :  { %1938 = vrot.lane.b32.xlu1 %v2023_v1, %s2574_s21 }
0x188a   :  { %v1923_v2 = vpop.permute.xlu1 %1922 }
0x188b   :  { %v1925_v6 = vadd.f32 %v1923_v2, %v1915_v54 }
0x188d   :  { %2512 = vtanh.f32 %v1925_v6 }
0x188e   :  { %v1939_v5 = vpop.permute.xlu1 %1938 }
0x1897   :  { %v2513_v8 = vpop.eup %2512 }
0x1898   :  { %1928 = vrot.lane.b32.xlu0 %v2513_v8, %s2571_s0 }
0x190a   :  { %v1929_v4 = vpop.permute.xlu0 %1928 }
0x190b   :  { %v1931_v10 = vmul.f32 %v2511_v31, %v1929_v4 }
0x190d   :  { %v1941_v11 = vmul.f32 %v1939_v5, %v1931_v10 }
0x190f   :  { %1943 = vrot.lane.b32.xlu0 %v1941_v11, %s2574_s21 }
0x1981   :  { %v1944_v57 = vpop.permute.xlu0 %1943 }
0x1982   :  { %v1947_v59 = vsel %vm1946_vm5, %v1944_v57, 0.0 }
0x1983   :  { %1948 = vadd.xlane.f32.xlu1 %v1947_v59 }
0x1a10   :  { %v1949_v14 = vpop.xlane.xlu1 %1948 }
0x1a11   :  { %v1957_v16 = vadd.f32 %v2024_v12, %v1949_v14 }
0x1a13   :  { %1959 = vst.msk [vmem:[%s3098_s9] sm:$0x3] %vm1958_vm6, %v1957_v16 }
0x1a14   :  { %1964 = vsyncpa [#allocation4], 1 }
0x1a15   :  { %1965 = vsyncpa [#allocation6], 1 }

</bundles_post_ra>
